<compile_context>
chip_gen: v7x
topology: tpu7x:2x2x1
jax: 0.10.0
libtpu: 0.0.40
codegen_flags: <defaults>
</compile_context>

<pallas_src>
import functools

import jax
import jax.numpy as jnp
from jax.experimental import pallas as pl
from jax.experimental.pallas import tpu as pltpu

BN_EPS = 1e-5
GIN_EPS = 0.0          # GINConv default eps (train_eps=False)
LANE = 128


def _round_up(v, m):
    return (v + m - 1) // m * m


def gin_2_bn_kernel(a_ref, x_ref, w1_ref, p1_ref, w2_ref, p2_ref, out_ref,
                    h_scr, hw2f_scr, hw2b_scr, s1_scr, q1_scr, s2_scr, q2_scr,
                    *, n_real, tile_m, out_dim):
    p = pl.program_id(0)            # 0: GIN layer 1, 1: GIN layer 2 (+ finalize)
    i = pl.program_id(1)            # destination-node row tile
    n_tiles = pl.num_programs(1)
    row_start = pl.multiple_of(i * tile_m, tile_m)

    # rows of this tile that correspond to real (non-padded) nodes
    row_ids = jax.lax.broadcasted_iota(jnp.int32, (tile_m, 1), 0) + row_start
    row_mask = (row_ids < n_real).astype(jnp.float32)

    @pl.when((p == 0) & (i == 0))
    def _init_stats():
        s1_scr[...] = jnp.zeros_like(s1_scr)
        q1_scr[...] = jnp.zeros_like(q1_scr)
        s2_scr[...] = jnp.zeros_like(s2_scr)
        q2_scr[...] = jnp.zeros_like(q2_scr)

    # ---------- pass 0: h_pre = Linear1((1+eps)x + A x), accumulate BN1 stats ----------
    @pl.when(p == 0)
    def _layer1():
        a_t = a_ref[...]                                            # (tile_m, n_pad) bf16
        agg = jnp.dot(a_t, x_ref[...], preferred_element_type=jnp.float32)
        x_self = x_ref[pl.ds(row_start, tile_m), :].astype(jnp.float32)
        agg = agg + (1.0 + GIN_EPS) * x_self
        pv = p1_ref[...]                                            # (3, hid_pad): b, gamma, beta
        h = jnp.dot(agg, w1_ref[...], preferred_element_type=jnp.float32) + pv[0:1, :]
        h_scr[pl.ds(row_start, tile_m), :] = h
        hm = h * row_mask
        s1_scr[...] += jnp.sum(hm, axis=0, keepdims=True)
        q1_scr[...] += jnp.sum(hm * hm, axis=0, keepdims=True)

    # ---------- between passes: finalize BN1 + ReLU, precompute h @ W2 ----------
    @pl.when((p == 1) & (i == 0))
    def _finalize_bn1():
        pv = p1_ref[...]
        inv_n = 1.0 / n_real
        mean1 = s1_scr[...] * inv_n
        var1 = jnp.maximum(q1_scr[...] * inv_n - mean1 * mean1, 0.0)
        inv1 = jax.lax.rsqrt(var1 + BN_EPS)
        hn = (h_scr[...] - mean1) * inv1 * pv[1:2, :] + pv[2:3, :]
        hn = jnp.maximum(hn, 0.0)
        # zero padded rows so they cannot contaminate BN2 statistics
        all_rows = jax.lax.broadcasted_iota(jnp.int32, (hn.shape[0], 1), 0)
        hn = jnp.where(all_rows < n_real, hn, 0.0)
        # reassociation: (A h) W2 == A (h W2) -> contract the smaller out dim against A
        hw2 = jnp.dot(hn, w2_ref[...], preferred_element_type=jnp.float32)
        hw2f_scr[...] = hw2
        hw2b_scr[...] = hw2.astype(jnp.bfloat16)

    # ---------- pass 1: z = (1+eps)hW2 + A(hW2) + b2, accumulate BN2 stats ----------
    @pl.when(p == 1)
    def _layer2():
        a_t = a_ref[...]
        z = jnp.dot(a_t, hw2b_scr[...], preferred_element_type=jnp.float32)
        z = z + (1.0 + GIN_EPS) * hw2f_scr[pl.ds(row_start, tile_m), :]
        z = z + p2_ref[...][0:1, :]
        out_ref[pl.ds(row_start, tile_m), :] = z        # stash pre-BN z in resident output
        zm = z * row_mask
        s2_scr[...] += jnp.sum(zm, axis=0, keepdims=True)
        q2_scr[...] += jnp.sum(zm * zm, axis=0, keepdims=True)

    # ---------- last grid step: BN2 + dropout(identity) + log_softmax ----------
    @pl.when((p == 1) & (i == n_tiles - 1))
    def _finalize():
        pv = p2_ref[...]
        inv_n = 1.0 / n_real
        mean2 = s2_scr[...] * inv_n
        var2 = jnp.maximum(q2_scr[...] * inv_n - mean2 * mean2, 0.0)
        inv2 = jax.lax.rsqrt(var2 + BN_EPS)
        z = (out_ref[...] - mean2) * inv2 * pv[1:2, :] + pv[2:3, :]
        # TODO(synk): F.dropout(training=True) is stochastic; applied as identity (eval semantics).
        col_ids = jax.lax.broadcasted_iota(jnp.int32, z.shape, 1)
        z = jnp.where(col_ids < out_dim, z, -1e30)      # exclude padded lanes from softmax
        m = jnp.max(z, axis=1, keepdims=True)
        sh = z - m
        lse = jnp.log(jnp.sum(jnp.exp(sh), axis=1, keepdims=True))
        out_ref[...] = sh - lse


@functools.partial(jax.jit, static_argnames=("num_nodes",))
def gin_2_bn_forward(x, edge_index, params, num_nodes):
    """x: [N, D_in] float32, edge_index: [2, E] int32 (row0=src, row1=dst)."""
    w1, b1, g1, bt1, w2, b2, g2, bt2 = params
    in_dim, hid_dim = w1.shape
    out_dim = w2.shape[1]

    n_pad = _round_up(num_nodes, LANE)
    d_pad = _round_up(in_dim, LANE)
    h_pad = _round_up(hid_dim, LANE)
    o_pad = _round_up(out_dim, LANE)

    # largest row tile that divides n_pad (streaming A dominates HBM traffic)
    tile_m = 512 if n_pad % 512 == 0 else (256 if n_pad % 256 == 0 else 128)
    n_tiles = n_pad // tile_m

    # Dense adjacency, rows = destination.  bf16 is exact for edge multiplicity <= 256.
    # TODO(synk): for realistic sparse graphs replace with CSR/edge-list aggregation.
    src, dst = edge_index[0], edge_index[1]
    a = jnp.zeros((n_pad, n_pad), jnp.float32).at[dst, src].add(1.0).astype(jnp.bfloat16)

    x_p = jnp.zeros((n_pad, d_pad), jnp.bfloat16).at[:num_nodes, :in_dim].set(
        x.astype(jnp.bfloat16))
    w1_p = jnp.zeros((d_pad, h_pad), jnp.float32).at[:in_dim, :hid_dim].set(w1)
    w2_p = jnp.zeros((h_pad, o_pad), jnp.float32).at[:hid_dim, :out_dim].set(w2)
    # pack (bias, gamma, beta) per layer; gamma padded with 0 keeps padded lanes exactly 0
    p1 = (jnp.zeros((3, h_pad), jnp.float32)
          .at[0, :hid_dim].set(b1.reshape(-1))
          .at[1, :hid_dim].set(g1.reshape(-1))
          .at[2, :hid_dim].set(bt1.reshape(-1)))
    p2 = (jnp.zeros((3, o_pad), jnp.float32)
          .at[0, :out_dim].set(b2.reshape(-1))
          .at[1, :out_dim].set(g2.reshape(-1))
          .at[2, :out_dim].set(bt2.reshape(-1)))

    vmem_est = (
        2 * tile_m * n_pad * 2             # double-buffered A tiles (bf16)
        + n_pad * d_pad * 2                # x (resident)
        + d_pad * h_pad * 4 + h_pad * o_pad * 4
        + n_pad * h_pad * 4                # pre-BN h scratch
        + n_pad * o_pad * (4 + 2 + 4)      # hW2 f32 + hW2 bf16 + resident output
        + (1 << 20)                        # small stats / params / slack
    )
    vmem_limit = int(min(max(2 * vmem_est, 16 * 1024 * 1024), 64 * 1024 * 1024))

    kernel = functools.partial(gin_2_bn_kernel, n_real=num_nodes,
                               tile_m=tile_m, out_dim=out_dim)

    out_p = pl.pallas_call(
        kernel,
        out_shape=jax.ShapeDtypeStruct((n_pad, o_pad), jnp.float32),
        grid_spec=pltpu.PrefetchScalarGridSpec(
            num_scalar_prefetch=0,
            grid=(2, n_tiles),
            in_specs=[
                pl.BlockSpec((tile_m, n_pad), lambda p, i: (i, 0)),   # A: streamed row tiles
                pl.BlockSpec((n_pad, d_pad), lambda p, i: (0, 0)),    # x: resident
                pl.BlockSpec((d_pad, h_pad), lambda p, i: (0, 0)),    # W1
                pl.BlockSpec((3, h_pad), lambda p, i: (0, 0)),        # b1/gamma1/beta1
                pl.BlockSpec((h_pad, o_pad), lambda p, i: (0, 0)),    # W2
                pl.BlockSpec((3, o_pad), lambda p, i: (0, 0)),        # b2/gamma2/beta2
            ],
            out_specs=pl.BlockSpec((n_pad, o_pad), lambda p, i: (0, 0)),
            scratch_shapes=[
                pltpu.VMEM((n_pad, h_pad), jnp.float32),   # pre-BN h1
                pltpu.VMEM((n_pad, o_pad), jnp.float32),   # h @ W2 (f32, self term)
                pltpu.VMEM((n_pad, o_pad), jnp.bfloat16),  # h @ W2 (bf16, MXU operand)
                pltpu.VMEM((1, h_pad), jnp.float32),       # BN1 sum
                pltpu.VMEM((1, h_pad), jnp.float32),       # BN1 sumsq
                pltpu.VMEM((1, o_pad), jnp.float32),       # BN2 sum
                pltpu.VMEM((1, o_pad), jnp.float32),       # BN2 sumsq
            ]),
        compiler_params=pltpu.CompilerParams(
            # Both axes carry sequential dependencies (BN batch stats, layer1->layer2
            # hand-off through VMEM scratch), so they must stay "arbitrary".
            dimension_semantics=("arbitrary", "arbitrary"),
            vmem_limit_bytes=vmem_limit),
    )(a, x_p, w1_p, p1, w2_p, p2)

    return out_p[:num_nodes, :out_dim]


def init_params(key, input_dim, hid_dim, out_dim):
    k1, k2, k3, k4 = jax.random.split(key, 4)
    # nn.Linear stores weight as (out, in); kernel consumes the transposed (in, out) matrix.
    lim1 = 1.0 / jnp.sqrt(input_dim)
    w1 = jax.random.uniform(k1, (input_dim, hid_dim), jnp.float32, -lim1, lim1)
    b1 = jax.random.uniform(k2, (1, hid_dim), jnp.float32, -lim1, lim1)
    lim2 = 1.0 / jnp.sqrt(hid_dim)
    w2 = jax.random.uniform(k3, (hid_dim, out_dim), jnp.float32, -lim2, lim2)
    b2 = jax.random.uniform(k4, (1, out_dim), jnp.float32, -lim2, lim2)
    # BatchNorm1d affine params: gamma=1, beta=0 (PyTorch default init).
    g1 = jnp.ones((1, hid_dim), jnp.float32)
    bt1 = jnp.zeros((1, hid_dim), jnp.float32)
    g2 = jnp.ones((1, out_dim), jnp.float32)
    bt2 = jnp.zeros((1, out_dim), jnp.float32)
    return (w1, b1, g1, bt1, w2, b2, g2, bt2)


if __name__ == "__main__":
    N, E = 16, 48
    INPUT_DIM, HID_DIM, OUT_DIM = 8, 32, 8

    key = jax.random.PRNGKey(0)
    kx, ke, kp = jax.random.split(key, 3)

    x = jax.random.normal(kx, (N, INPUT_DIM), jnp.float32)
    edge_index = jax.random.randint(ke, (2, E), 0, N, jnp.int32)
    params = init_params(kp, INPUT_DIM, HID_DIM, OUT_DIM)

    out = gin_2_bn_forward(x, edge_index, params, num_nodes=N)
    out = jax.block_until_ready(out)

    assert out.shape == (N, OUT_DIM) and out.dtype == jnp.float32
    assert bool(jnp.all(jnp.isfinite(out)))
    # log_softmax rows should exponentiate-sum to ~1
    assert jnp.allclose(jnp.sum(jnp.exp(out), axis=1), 1.0, atol=1e-3)
    print("KERNEL_OK")
</pallas_src>

<mosaic_0001>
module attributes {stable_mosaic.version = 11 : i64} {
  func.func private @main(%arg0: i32) attributes {dimension_semantics = [#tpu.dimension_semantics<core_parallel>], iteration_bounds = array<i64: 2>, tpu.core_type = #tpu.core_type<sc_scalar_subcore>, window_params = []} {
    return
  }
}

module attributes {stable_mosaic.version = 11 : i64} {
  func.func private @main(%arg0: i32) attributes {dimension_semantics = [#tpu.dimension_semantics<core_parallel>], iteration_bounds = array<i64: 2>, tpu.core_type = #tpu.core_type<sc_scalar_subcore>, window_params = []} {
    return
  }
}

module attributes {stable_mosaic.version = 11 : i64} {
  func.func @gin_2_bn_kernel(%arg0: i32, %arg1: i32, %arg2: memref<128x128xbf16, #tpu.memory_space<vmem>>, %arg3: memref<128x128xbf16, #tpu.memory_space<vmem>>, %arg4: memref<128x128xf32, #tpu.memory_space<vmem>>, %arg5: memref<3x128xf32, #tpu.memory_space<vmem>>, %arg6: memref<128x128xf32, #tpu.memory_space<vmem>>, %arg7: memref<3x128xf32, #tpu.memory_space<vmem>>, %arg8: memref<128x128xf32, #tpu.memory_space<vmem>>, %arg9: memref<128x128xf32, #tpu.memory_space<vmem>>, %arg10: memref<128x128xf32, #tpu.memory_space<vmem>>, %arg11: memref<128x128xbf16, #tpu.memory_space<vmem>>, %arg12: memref<1x128xf32, #tpu.memory_space<vmem>>, %arg13: memref<1x128xf32, #tpu.memory_space<vmem>>, %arg14: memref<1x128xf32, #tpu.memory_space<vmem>>, %arg15: memref<1x128xf32, #tpu.memory_space<vmem>>) attributes {dimension_semantics = [#tpu.dimension_semantics<arbitrary>, #tpu.dimension_semantics<arbitrary>], iteration_bounds = array<i64: 2, 1>, scalar_prefetch = 0 : i64, scratch_operands = 7 : i64, tpu.core_type = #tpu.core_type<tc>, window_params = [{transform_indices = @transform_0, window_bounds = array<i64: 128, 128>}, {pipeline_mode = #tpu.pipeline_mode<synchronous>, transform_indices = @transform_1, window_bounds = array<i64: 128, 128>}, {pipeline_mode = #tpu.pipeline_mode<synchronous>, transform_indices = @transform_2, window_bounds = array<i64: 128, 128>}, {pipeline_mode = #tpu.pipeline_mode<synchronous>, transform_indices = @transform_3, window_bounds = array<i64: 3, 128>}, {pipeline_mode = #tpu.pipeline_mode<synchronous>, transform_indices = @transform_4, window_bounds = array<i64: 128, 128>}, {pipeline_mode = #tpu.pipeline_mode<synchronous>, transform_indices = @transform_5, window_bounds = array<i64: 3, 128>}, {pipeline_mode = #tpu.pipeline_mode<synchronous>, transform_indices = @transform_6, window_bounds = array<i64: 128, 128>}]} {
    %c128_i32 = arith.constant 128 : i32
    %0 = arith.muli %arg1, %c128_i32 : i32
    %1 = tpu.assume_multiple %0, 128 : i32
    %2 = tpu.iota {dimensions = array<i32: 0>} : vector<128x1xi32>
    %3 = vector.broadcast %1 : i32 to vector<128x1xi32>
    %4 = arith.addi %2, %3 : vector<128x1xi32>
    %c16_i32 = arith.constant 16 : i32
    %5 = vector.broadcast %c16_i32 : i32 to vector<128x1xi32>
    %6 = arith.cmpi slt, %4, %5 : vector<128x1xi32>
    %7 = arith.extui %6 : vector<128x1xi1> to vector<128x1xi32>
    %8 = arith.sitofp %7 : vector<128x1xi32> to vector<128x1xf32>
    %c0_i32 = arith.constant 0 : i32
    %9 = arith.cmpi eq, %arg0, %c0_i32 : i32
    %c0_i32_0 = arith.constant 0 : i32
    %10 = arith.cmpi eq, %arg1, %c0_i32_0 : i32
    %11 = arith.andi %9, %10 : i1
    %12 = arith.extui %11 : i1 to i32
    %c0_i32_1 = arith.constant 0 : i32
    %13 = arith.cmpi ne, %12, %c0_i32_1 : i32
    scf.if %13 {
      %cst = arith.constant 0.000000e+00 : f32
      %30 = vector.broadcast %cst : f32 to vector<1x128xf32>
      %c0 = arith.constant 0 : index
      %c0_11 = arith.constant 0 : index
      %31 = vector.load %arg12[%c0, %c0_11] : memref<1x128xf32, #tpu.memory_space<vmem>>, vector<1x128xf32>
      tpu.vector_store %arg12[%c0, %c0_11], %30 {strides = array<i32>} : memref<1x128xf32, #tpu.memory_space<vmem>>, vector<1x128xf32>,
      %cst_12 = arith.constant 0.000000e+00 : f32
      %32 = vector.broadcast %cst_12 : f32 to vector<1x128xf32>
      %c0_13 = arith.constant 0 : index
      %c0_14 = arith.constant 0 : index
      %33 = vector.load %arg13[%c0_13, %c0_14] : memref<1x128xf32, #tpu.memory_space<vmem>>, vector<1x128xf32>
      tpu.vector_store %arg13[%c0_13, %c0_14], %32 {strides = array<i32>} : memref<1x128xf32, #tpu.memory_space<vmem>>, vector<1x128xf32>,
      %cst_15 = arith.constant 0.000000e+00 : f32
      %34 = vector.broadcast %cst_15 : f32 to vector<1x128xf32>
      %c0_16 = arith.constant 0 : index
      %c0_17 = arith.constant 0 : index
      %35 = vector.load %arg14[%c0_16, %c0_17] : memref<1x128xf32, #tpu.memory_space<vmem>>, vector<1x128xf32>
      tpu.vector_store %arg14[%c0_16, %c0_17], %34 {strides = array<i32>} : memref<1x128xf32, #tpu.memory_space<vmem>>, vector<1x128xf32>,
      %cst_18 = arith.constant 0.000000e+00 : f32
      %36 = vector.broadcast %cst_18 : f32 to vector<1x128xf32>
      %c0_19 = arith.constant 0 : index
      %c0_20 = arith.constant 0 : index
      %37 = vector.load %arg15[%c0_19, %c0_20] : memref<1x128xf32, #tpu.memory_space<vmem>>, vector<1x128xf32>
      tpu.vector_store %arg15[%c0_19, %c0_20], %36 {strides = array<i32>} : memref<1x128xf32, #tpu.memory_space<vmem>>, vector<1x128xf32>,
    } else {
    }
    %c0_i32_2 = arith.constant 0 : i32
    %14 = arith.cmpi eq, %arg0, %c0_i32_2 : i32
    %15 = arith.extui %14 : i1 to i32
    %c0_i32_3 = arith.constant 0 : i32
    %16 = arith.cmpi ne, %15, %c0_i32_3 : i32
    scf.if %16 {
      %c0 = arith.constant 0 : index
      %c0_11 = arith.constant 0 : index
      %30 = vector.load %arg2[%c0, %c0_11] : memref<128x128xbf16, #tpu.memory_space<vmem>>, vector<128x128xbf16>
      %c0_12 = arith.constant 0 : index
      %c0_13 = arith.constant 0 : index
      %31 = vector.load %arg3[%c0_12, %c0_13] : memref<128x128xbf16, #tpu.memory_space<vmem>>, vector<128x128xbf16>
      %cst = arith.constant dense<0.000000e+00> : vector<128x128xf32>
      %32 = tpu.matmul %30, %31, %cst {dimension_numbers = #tpu.dot_dimension_numbers<[1], [0], [0], [1], [0, 0, 1, 1], [], []>} : vector<128x128xbf16>, vector<128x128xbf16>, vector<128x128xf32> -> vector<128x128xf32>
      %33 = arith.index_cast %1 : i32 to index
      %c0_14 = arith.constant 0 : index
      %34 = vector.load %arg3[%33, %c0_14] : memref<128x128xbf16, #tpu.memory_space<vmem>>, vector<128x128xbf16>
      %35 = arith.extf %34 : vector<128x128xbf16> to vector<128x128xf32>
      %cst_15 = arith.constant 1.000000e+00 : f32
      %36 = vector.broadcast %cst_15 : f32 to vector<128x128xf32>
      %37 = arith.mulf %36, %35 : vector<128x128xf32>
      %38 = arith.addf %32, %37 : vector<128x128xf32>
      %c0_16 = arith.constant 0 : index
      %c0_17 = arith.constant 0 : index
      %39 = vector.load %arg5[%c0_16, %c0_17] : memref<3x128xf32, #tpu.memory_space<vmem>>, vector<3x128xf32>
      %c0_18 = arith.constant 0 : index
      %c0_19 = arith.constant 0 : index
      %40 = vector.load %arg4[%c0_18, %c0_19] : memref<128x128xf32, #tpu.memory_space<vmem>>, vector<128x128xf32>
      %cst_20 = arith.constant dense<0.000000e+00> : vector<128x128xf32>
      %41 = tpu.matmul %38, %40, %cst_20 {dimension_numbers = #tpu.dot_dimension_numbers<[1], [0], [0], [1], [0, 0, 1, 1], [], []>} : vector<128x128xf32>, vector<128x128xf32>, vector<128x128xf32> -> vector<128x128xf32>
      %42 = vector.extract_strided_slice %39 {offsets = [0, 0], sizes = [1, 128], strides = [1, 1]} : vector<3x128xf32> to vector<1x128xf32>
      %43 = vector.broadcast %42 : vector<1x128xf32> to vector<128x128xf32>
      %44 = arith.addf %41, %43 : vector<128x128xf32>
      %45 = arith.index_cast %1 : i32 to index
      %c0_21 = arith.constant 0 : index
      %46 = vector.load %arg9[%45, %c0_21] : memref<128x128xf32, #tpu.memory_space<vmem>>, vector<128x128xf32>
      tpu.vector_store %arg9[%45, %c0_21], %44 {strides = array<i32>} : memref<128x128xf32, #tpu.memory_space<vmem>>, vector<128x128xf32>,
      %47 = vector.broadcast %8 : vector<128x1xf32> to vector<128x128xf32>
      %48 = arith.mulf %44, %47 : vector<128x128xf32>
      %c0_22 = arith.constant 0 : index
      %c0_23 = arith.constant 0 : index
      %49 = vector.load %arg12[%c0_22, %c0_23] : memref<1x128xf32, #tpu.memory_space<vmem>>, vector<1x128xf32>
      %cst_24 = arith.constant dense<0.000000e+00> : vector<128xf32>
      %50 = vector.multi_reduction <add>, %48, %cst_24 [0] : vector<128x128xf32> to vector<128xf32>
      %51 = vector.shape_cast %50 : vector<128xf32> to vector<1x128xf32>
      %52 = arith.addf %49, %51 : vector<1x128xf32>
      %c0_25 = arith.constant 0 : index
      %c0_26 = arith.constant 0 : index
      %53 = vector.load %arg12[%c0_25, %c0_26] : memref<1x128xf32, #tpu.memory_space<vmem>>, vector<1x128xf32>
      tpu.vector_store %arg12[%c0_25, %c0_26], %52 {strides = array<i32>} : memref<1x128xf32, #tpu.memory_space<vmem>>, vector<1x128xf32>,
      %c0_27 = arith.constant 0 : index
      %c0_28 = arith.constant 0 : index
      %54 = vector.load %arg13[%c0_27, %c0_28] : memref<1x128xf32, #tpu.memory_space<vmem>>, vector<1x128xf32>
      %55 = arith.mulf %48, %48 : vector<128x128xf32>
      %cst_29 = arith.constant dense<0.000000e+00> : vector<128xf32>
      %56 = vector.multi_reduction <add>, %55, %cst_29 [0] : vector<128x128xf32> to vector<128xf32>
      %57 = vector.shape_cast %56 : vector<128xf32> to vector<1x128xf32>
      %58 = arith.addf %54, %57 : vector<1x128xf32>
      %c0_30 = arith.constant 0 : index
      %c0_31 = arith.constant 0 : index
      %59 = vector.load %arg13[%c0_30, %c0_31] : memref<1x128xf32, #tpu.memory_space<vmem>>, vector<1x128xf32>
      tpu.vector_store %arg13[%c0_30, %c0_31], %58 {strides = array<i32>} : memref<1x128xf32, #tpu.memory_space<vmem>>, vector<1x128xf32>,
    } else {
    }
    %c1_i32 = arith.constant 1 : i32
    %17 = arith.cmpi eq, %arg0, %c1_i32 : i32
    %c0_i32_4 = arith.constant 0 : i32
    %18 = arith.cmpi eq, %arg1, %c0_i32_4 : i32
    %19 = arith.andi %17, %18 : i1
    %20 = arith.extui %19 : i1 to i32
    %c0_i32_5 = arith.constant 0 : i32
    %21 = arith.cmpi ne, %20, %c0_i32_5 : i32
    scf.if %21 {
      %c0 = arith.constant 0 : index
      %c0_11 = arith.constant 0 : index
      %30 = vector.load %arg5[%c0, %c0_11] : memref<3x128xf32, #tpu.memory_space<vmem>>, vector<3x128xf32>
      %c0_12 = arith.constant 0 : index
      %c0_13 = arith.constant 0 : index
      %31 = vector.load %arg12[%c0_12, %c0_13] : memref<1x128xf32, #tpu.memory_space<vmem>>, vector<1x128xf32>
      %cst = arith.constant 6.250000e-02 : f32
      %32 = vector.broadcast %cst : f32 to vector<1x128xf32>
      %33 = arith.mulf %31, %32 : vector<1x128xf32>
      %c0_14 = arith.constant 0 : index
      %c0_15 = arith.constant 0 : index
      %34 = vector.load %arg13[%c0_14, %c0_15] : memref<1x128xf32, #tpu.memory_space<vmem>>, vector<1x128xf32>
      %cst_16 = arith.constant 6.250000e-02 : f32
      %35 = vector.broadcast %cst_16 : f32 to vector<1x128xf32>
      %36 = arith.mulf %34, %35 : vector<1x128xf32>
      %37 = arith.mulf %33, %33 : vector<1x128xf32>
      %38 = arith.subf %36, %37 : vector<1x128xf32>
      %cst_17 = arith.constant 0.000000e+00 : f32
      %39 = vector.broadcast %cst_17 : f32 to vector<1x128xf32>
      %40 = arith.maximumf %38, %39 : vector<1x128xf32>
      %cst_18 = arith.constant 9.99999974E-6 : f32
      %41 = vector.broadcast %cst_18 : f32 to vector<1x128xf32>
      %42 = arith.addf %40, %41 : vector<1x128xf32>
      %43 = math.rsqrt %42 : vector<1x128xf32>
      %c0_19 = arith.constant 0 : index
      %c0_20 = arith.constant 0 : index
      %44 = vector.load %arg9[%c0_19, %c0_20] : memref<128x128xf32, #tpu.memory_space<vmem>>, vector<128x128xf32>
      %45 = vector.broadcast %33 : vector<1x128xf32> to vector<128x128xf32>
      %46 = arith.subf %44, %45 : vector<128x128xf32>
      %47 = vector.broadcast %43 : vector<1x128xf32> to vector<128x128xf32>
      %48 = arith.mulf %46, %47 : vector<128x128xf32>
      %49 = vector.extract_strided_slice %30 {offsets = [1, 0], sizes = [1, 128], strides = [1, 1]} : vector<3x128xf32> to vector<1x128xf32>
      %50 = vector.broadcast %49 : vector<1x128xf32> to vector<128x128xf32>
      %51 = arith.mulf %48, %50 : vector<128x128xf32>
      %52 = vector.extract_strided_slice %30 {offsets = [2, 0], sizes = [1, 128], strides = [1, 1]} : vector<3x128xf32> to vector<1x128xf32>
      %53 = vector.broadcast %52 : vector<1x128xf32> to vector<128x128xf32>
      %54 = arith.addf %51, %53 : vector<128x128xf32>
      %cst_21 = arith.constant 0.000000e+00 : f32
      %55 = vector.broadcast %cst_21 : f32 to vector<128x128xf32>
      %56 = arith.maximumf %54, %55 : vector<128x128xf32>
      %57 = tpu.iota {dimensions = array<i32: 0>} : vector<128x1xi32>
      %c16_i32_22 = arith.constant 16 : i32
      %58 = vector.broadcast %c16_i32_22 : i32 to vector<128x1xi32>
      %59 = arith.cmpi slt, %57, %58 : vector<128x1xi32>
      %cst_23 = arith.constant 0.000000e+00 : f32
      %60 = vector.shape_cast %59 : vector<128x1xi1> to vector<128x1xi1>
      %61 = vector.broadcast %60 : vector<128x1xi1> to vector<128x128xi1>
      %62 = vector.broadcast %cst_23 : f32 to vector<128x128xf32>
      %63 = arith.select %61, %56, %62 : vector<128x128xi1>, vector<128x128xf32>
      %c0_24 = arith.constant 0 : index
      %c0_25 = arith.constant 0 : index
      %64 = vector.load %arg6[%c0_24, %c0_25] : memref<128x128xf32, #tpu.memory_space<vmem>>, vector<128x128xf32>
      %cst_26 = arith.constant dense<0.000000e+00> : vector<128x128xf32>
      %65 = tpu.matmul %63, %64, %cst_26 {dimension_numbers = #tpu.dot_dimension_numbers<[1], [0], [0], [1], [0, 0, 1, 1], [], []>} : vector<128x128xf32>, vector<128x128xf32>, vector<128x128xf32> -> vector<128x128xf32>
      %c0_27 = arith.constant 0 : index
      %c0_28 = arith.constant 0 : index
      %66 = vector.load %arg10[%c0_27, %c0_28] : memref<128x128xf32, #tpu.memory_space<vmem>>, vector<128x128xf32>
      tpu.vector_store %arg10[%c0_27, %c0_28], %65 {strides = array<i32>} : memref<128x128xf32, #tpu.memory_space<vmem>>, vector<128x128xf32>,
      %67 = arith.truncf %65 : vector<128x128xf32> to vector<128x128xbf16>
      %c0_29 = arith.constant 0 : index
      %c0_30 = arith.constant 0 : index
      %68 = vector.load %arg11[%c0_29, %c0_30] : memref<128x128xbf16, #tpu.memory_space<vmem>>, vector<128x128xbf16>
      tpu.vector_store %arg11[%c0_29, %c0_30], %67 {strides = array<i32>} : memref<128x128xbf16, #tpu.memory_space<vmem>>, vector<128x128xbf16>,
    } else {
    }
    %c1_i32_6 = arith.constant 1 : i32
    %22 = arith.cmpi eq, %arg0, %c1_i32_6 : i32
    %23 = arith.extui %22 : i1 to i32
    %c0_i32_7 = arith.constant 0 : i32
    %24 = arith.cmpi ne, %23, %c0_i32_7 : i32
    scf.if %24 {
      %c0 = arith.constant 0 : index
      %c0_11 = arith.constant 0 : index
      %30 = vector.load %arg2[%c0, %c0_11] : memref<128x128xbf16, #tpu.memory_space<vmem>>, vector<128x128xbf16>
      %c0_12 = arith.constant 0 : index
      %c0_13 = arith.constant 0 : index
      %31 = vector.load %arg11[%c0_12, %c0_13] : memref<128x128xbf16, #tpu.memory_space<vmem>>, vector<128x128xbf16>
      %cst = arith.constant dense<0.000000e+00> : vector<128x128xf32>
      %32 = tpu.matmul %30, %31, %cst {dimension_numbers = #tpu.dot_dimension_numbers<[1], [0], [0], [1], [0, 0, 1, 1], [], []>} : vector<128x128xbf16>, vector<128x128xbf16>, vector<128x128xf32> -> vector<128x128xf32>
      %33 = arith.index_cast %1 : i32 to index
      %c0_14 = arith.constant 0 : index
      %34 = vector.load %arg10[%33, %c0_14] : memref<128x128xf32, #tpu.memory_space<vmem>>, vector<128x128xf32>
      %cst_15 = arith.constant 1.000000e+00 : f32
      %35 = vector.broadcast %cst_15 : f32 to vector<128x128xf32>
      %36 = arith.mulf %35, %34 : vector<128x128xf32>
      %37 = arith.addf %32, %36 : vector<128x128xf32>
      %c0_16 = arith.constant 0 : index
      %c0_17 = arith.constant 0 : index
      %38 = vector.load %arg7[%c0_16, %c0_17] : memref<3x128xf32, #tpu.memory_space<vmem>>, vector<3x128xf32>
      %39 = vector.extract_strided_slice %38 {offsets = [0, 0], sizes = [1, 128], strides = [1, 1]} : vector<3x128xf32> to vector<1x128xf32>
      %40 = vector.broadcast %39 : vector<1x128xf32> to vector<128x128xf32>
      %41 = arith.addf %37, %40 : vector<128x128xf32>
      %42 = arith.index_cast %1 : i32 to index
      %c0_18 = arith.constant 0 : index
      %43 = vector.load %arg8[%42, %c0_18] : memref<128x128xf32, #tpu.memory_space<vmem>>, vector<128x128xf32>
      tpu.vector_store %arg8[%42, %c0_18], %41 {strides = array<i32>} : memref<128x128xf32, #tpu.memory_space<vmem>>, vector<128x128xf32>,
      %44 = vector.broadcast %8 : vector<128x1xf32> to vector<128x128xf32>
      %45 = arith.mulf %41, %44 : vector<128x128xf32>
      %c0_19 = arith.constant 0 : index
      %c0_20 = arith.constant 0 : index
      %46 = vector.load %arg14[%c0_19, %c0_20] : memref<1x128xf32, #tpu.memory_space<vmem>>, vector<1x128xf32>
      %cst_21 = arith.constant dense<0.000000e+00> : vector<128xf32>
      %47 = vector.multi_reduction <add>, %45, %cst_21 [0] : vector<128x128xf32> to vector<128xf32>
      %48 = vector.shape_cast %47 : vector<128xf32> to vector<1x128xf32>
      %49 = arith.addf %46, %48 : vector<1x128xf32>
      %c0_22 = arith.constant 0 : index
      %c0_23 = arith.constant 0 : index
      %50 = vector.load %arg14[%c0_22, %c0_23] : memref<1x128xf32, #tpu.memory_space<vmem>>, vector<1x128xf32>
      tpu.vector_store %arg14[%c0_22, %c0_23], %49 {strides = array<i32>} : memref<1x128xf32, #tpu.memory_space<vmem>>, vector<1x128xf32>,
      %c0_24 = arith.constant 0 : index
      %c0_25 = arith.constant 0 : index
      %51 = vector.load %arg15[%c0_24, %c0_25] : memref<1x128xf32, #tpu.memory_space<vmem>>, vector<1x128xf32>
      %52 = arith.mulf %45, %45 : vector<128x128xf32>
      %cst_26 = arith.constant dense<0.000000e+00> : vector<128xf32>
      %53 = vector.multi_reduction <add>, %52, %cst_26 [0] : vector<128x128xf32> to vector<128xf32>
      %54 = vector.shape_cast %53 : vector<128xf32> to vector<1x128xf32>
      %55 = arith.addf %51, %54 : vector<1x128xf32>
      %c0_27 = arith.constant 0 : index
      %c0_28 = arith.constant 0 : index
      %56 = vector.load %arg15[%c0_27, %c0_28] : memref<1x128xf32, #tpu.memory_space<vmem>>, vector<1x128xf32>
      tpu.vector_store %arg15[%c0_27, %c0_28], %55 {strides = array<i32>} : memref<1x128xf32, #tpu.memory_space<vmem>>, vector<1x128xf32>,
    } else {
    }
    %c1_i32_8 = arith.constant 1 : i32
    %25 = arith.cmpi eq, %arg0, %c1_i32_8 : i32
    %c0_i32_9 = arith.constant 0 : i32
    %26 = arith.cmpi eq, %arg1, %c0_i32_9 : i32
    %27 = arith.andi %25, %26 : i1
    %28 = arith.extui %27 : i1 to i32
    %c0_i32_10 = arith.constant 0 : i32
    %29 = arith.cmpi ne, %28, %c0_i32_10 : i32
    scf.if %29 {
      %c0 = arith.constant 0 : index
      %c0_11 = arith.constant 0 : index
      %30 = vector.load %arg7[%c0, %c0_11] : memref<3x128xf32, #tpu.memory_space<vmem>>, vector<3x128xf32>
      %c0_12 = arith.constant 0 : index
      %c0_13 = arith.constant 0 : index
      %31 = vector.load %arg14[%c0_12, %c0_13] : memref<1x128xf32, #tpu.memory_space<vmem>>, vector<1x128xf32>
      %cst = arith.constant 6.250000e-02 : f32
      %32 = vector.broadcast %cst : f32 to vector<1x128xf32>
      %33 = arith.mulf %31, %32 : vector<1x128xf32>
      %c0_14 = arith.constant 0 : index
      %c0_15 = arith.constant 0 : index
      %34 = vector.load %arg15[%c0_14, %c0_15] : memref<1x128xf32, #tpu.memory_space<vmem>>, vector<1x128xf32>
      %cst_16 = arith.constant 6.250000e-02 : f32
      %35 = vector.broadcast %cst_16 : f32 to vector<1x128xf32>
      %36 = arith.mulf %34, %35 : vector<1x128xf32>
      %37 = arith.mulf %33, %33 : vector<1x128xf32>
      %38 = arith.subf %36, %37 : vector<1x128xf32>
      %cst_17 = arith.constant 0.000000e+00 : f32
      %39 = vector.broadcast %cst_17 : f32 to vector<1x128xf32>
      %40 = arith.maximumf %38, %39 : vector<1x128xf32>
      %cst_18 = arith.constant 9.99999974E-6 : f32
      %41 = vector.broadcast %cst_18 : f32 to vector<1x128xf32>
      %42 = arith.addf %40, %41 : vector<1x128xf32>
      %43 = math.rsqrt %42 : vector<1x128xf32>
      %c0_19 = arith.constant 0 : index
      %c0_20 = arith.constant 0 : index
      %44 = vector.load %arg8[%c0_19, %c0_20] : memref<128x128xf32, #tpu.memory_space<vmem>>, vector<128x128xf32>
      %45 = vector.broadcast %33 : vector<1x128xf32> to vector<128x128xf32>
      %46 = arith.subf %44, %45 : vector<128x128xf32>
      %47 = vector.broadcast %43 : vector<1x128xf32> to vector<128x128xf32>
      %48 = arith.mulf %46, %47 : vector<128x128xf32>
      %49 = vector.extract_strided_slice %30 {offsets = [1, 0], sizes = [1, 128], strides = [1, 1]} : vector<3x128xf32> to vector<1x128xf32>
      %50 = vector.broadcast %49 : vector<1x128xf32> to vector<128x128xf32>
      %51 = arith.mulf %48, %50 : vector<128x128xf32>
      %52 = vector.extract_strided_slice %30 {offsets = [2, 0], sizes = [1, 128], strides = [1, 1]} : vector<3x128xf32> to vector<1x128xf32>
      %53 = vector.broadcast %52 : vector<1x128xf32> to vector<128x128xf32>
      %54 = arith.addf %51, %53 : vector<128x128xf32>
      %55 = tpu.iota {dimensions = array<i32: 1>} : vector<128x128xi32>
      %c8_i32 = arith.constant 8 : i32
      %56 = vector.broadcast %c8_i32 : i32 to vector<128x128xi32>
      %57 = arith.cmpi slt, %55, %56 : vector<128x128xi32>
      %cst_21 = arith.constant -1.000000e+30 : f32
      %58 = vector.broadcast %cst_21 : f32 to vector<128x128xf32>
      %59 = arith.select %57, %54, %58 : vector<128x128xi1>, vector<128x128xf32>
      %cst_22 = arith.constant dense<0xFF800000> : vector<128xf32>
      %60 = vector.multi_reduction <maximumf>, %59, %cst_22 [1] : vector<128x128xf32> to vector<128xf32>
      %61 = vector.shape_cast %60 : vector<128xf32> to vector<128x1xf32>
      %62 = vector.broadcast %61 : vector<128x1xf32> to vector<128x128xf32>
      %63 = arith.subf %59, %62 : vector<128x128xf32>
      %64 = math.exp %63 : vector<128x128xf32>
      %cst_23 = arith.constant dense<0.000000e+00> : vector<128xf32>
      %65 = vector.multi_reduction <add>, %64, %cst_23 [1] : vector<128x128xf32> to vector<128xf32>
      %66 = vector.shape_cast %65 : vector<128xf32> to vector<128x1xf32>
      %67 = math.log %66 : vector<128x1xf32>
      %68 = vector.broadcast %67 : vector<128x1xf32> to vector<128x128xf32>
      %69 = arith.subf %63, %68 : vector<128x128xf32>
      %c0_24 = arith.constant 0 : index
      %c0_25 = arith.constant 0 : index
      %70 = vector.load %arg8[%c0_24, %c0_25] : memref<128x128xf32, #tpu.memory_space<vmem>>, vector<128x128xf32>
      tpu.vector_store %arg8[%c0_24, %c0_25], %69 {strides = array<i32>} : memref<128x128xf32, #tpu.memory_space<vmem>>, vector<128x128xf32>,
    } else {
    }
    return
  }
  func.func @transform_0(%arg0: i32, %arg1: i32) -> (i32, i32) {
    %c0_i32 = arith.constant 0 : i32
    %c0_i32_0 = arith.constant 0 : i32
    return %arg1, %c0_i32 : i32, i32
  }
  func.func @transform_1(%arg0: i32, %arg1: i32) -> (i32, i32) {
    %c0_i32 = arith.constant 0 : i32
    %c0_i32_0 = arith.constant 0 : i32
    %c0_i32_1 = arith.constant 0 : i32
    return %c0_i32, %c0_i32_0 : i32, i32
  }
  func.func @transform_2(%arg0: i32, %arg1: i32) -> (i32, i32) {
    %c0_i32 = arith.constant 0 : i32
    %c0_i32_0 = arith.constant 0 : i32
    %c0_i32_1 = arith.constant 0 : i32
    return %c0_i32, %c0_i32_0 : i32, i32
  }
  func.func @transform_3(%arg0: i32, %arg1: i32) -> (i32, i32) {
    %c0_i32 = arith.constant 0 : i32
    %c0_i32_0 = arith.constant 0 : i32
    %c0_i32_1 = arith.constant 0 : i32
    return %c0_i32, %c0_i32_0 : i32, i32
  }
  func.func @transform_4(%arg0: i32, %arg1: i32) -> (i32, i32) {
    %c0_i32 = arith.constant 0 : i32
    %c0_i32_0 = arith.constant 0 : i32
    %c0_i32_1 = arith.constant 0 : i32
    return %c0_i32, %c0_i32_0 : i32, i32
  }
  func.func @transform_5(%arg0: i32, %arg1: i32) -> (i32, i32) {
    %c0_i32 = arith.constant 0 : i32
    %c0_i32_0 = arith.constant 0 : i32
    %c0_i32_1 = arith.constant 0 : i32
    return %c0_i32, %c0_i32_0 : i32, i32
  }
  func.func @transform_6(%arg0: i32, %arg1: i32) -> (i32, i32) {
    %c0_i32 = arith.constant 0 : i32
    %c0_i32_0 = arith.constant 0 : i32
    %c0_i32_1 = arith.constant 0 : i32
    return %c0_i32, %c0_i32_0 : i32, i32
  }
}

</mosaic_0001>

<bundles_post_ra>
// kernel: gin_2_bn_forward.1
= control target key start
LH: loop header
LB: loop body
LE: loop exit
PB: predicated region body
PF: predicated region fallthrough
CT: control target
= control target key end

     0   :  { %s2544_s21 = smov 0   ;;  %s2546_s22 = smov 0   ;;  %s3226_s0 = inlined_call_operand.vmem [shape: bf16[128,128], index: 0, kind: input, shape index: {}]   ;;  %s3227_s1 = inlined_call_operand.vmem [shape: bf16[128,128], index: 1, kind: input, shape index: {}]   ;;  %s3228_s2 = inlined_call_operand.vmem [shape: f32[128,128], index: 2, kind: input, shape index: {}]   ;;  %s3229_s3 = inlined_call_operand.vmem [shape: f32[3,128], index: 3, kind: input, shape index: {}]   ;;  %s3230_s4 = inlined_call_operand.vmem [shape: f32[128,128], index: 4, kind: input, shape index: {}]   ;;  %s3231_s5 = inlined_call_operand.vmem [shape: f32[3,128], index: 5, kind: input, shape index: {}]   ;;  %s3232_s6 = inlined_call_operand.vmem [shape: f32[128,128], index: 6, kind: output, shape index: {}]  }
   0x1   :  { %s2548_s23 = smov 0  }
   0x2 LB: > { %s28_s24 = sadd.s32 1, %s2501_s22  ;;  %p1925_p0 = scmp.ge.s32.totalorder %s2505_s23, 1  ;;  %s2505_s23 = sphi %s2548_s23, %s16_s23   ;;  %s2501_s22 = sphi %s2546_s22, %s3234_s22   ;;  %s2497_s21 = sphi %s2544_s21, %s3233_s21  }
   0x3   : > { %p30_p1 = scmp.ge.s32.totalorder %s28_s24, 2  ;;  %p220_p2 = scmp.lt.s32.totalorder %s2505_s23, 3 }
   0x5   : > { %s3236_s24 = smov (%p30_p1, %s28_s24), 0  ;;  %p221_p3 = pnand %p1925_p0, %p220_p2 }
   0x6   : > { %p335_p4 = scmp.eq.s32.totalorder (!%p221_p3), %s2497_s21, 0 }
   0x7   : > { %224 = sbr.rel (%p221_p3) target bundleno = 1487 (0x5cf), region = 44 }
   0xe   : > { %340 = sbr.rel (!%p335_p4) target bundleno = 21 (0x15), region = 48  ;;  %v2507_v0 = vmov (%p335_p4), 0.0  }
   0xf   : > { %341 = vst [vmem:[#allocation5] sm:$0x1] (%p335_p4), %v2507_v0  ;;  %342 = vst [vmem:[#allocation6] sm:$0x1] (%p335_p4), %v2507_v0 }
  0x10   : > { %343 = vst [vmem:[#allocation7] sm:$0x1] (%p335_p4), %v2507_v0  ;;  %344 = vst [vmem:[#allocation8] sm:$0x1] (%p335_p4), %v2507_v0 }
  0x15 PF: > { %p1927_p5 = scmp.ne.s32.totalorder %s2497_s21, 0 }
  0x16   : > { %v2391_v1 = vld [vmem:[%s3227_s1] sm:$0xff] (!%p1927_p5)   ;;  %v2392_v2 = vld [vmem:[%s3227_s1 + $0x8] sm:$0xff] (!%p1927_p5)   ;;  %v2393_v3 = vld [vmem:[%s3227_s1 + $0x10] sm:$0xff] (!%p1927_p5)  }
  0x17   : > { %347 = sbr.rel (%p1927_p5) target bundleno = 538 (0x21a), region = 52  ;;  %2093 = vmatprep.subr.bf16.mxu0 (!%p1927_p5), %v2391_v1  ;;  %v2394_v4 = vld [vmem:[%s3227_s1 + $0x18] sm:$0xff] (!%p1927_p5)   ;;  %v2399_v5 = vld [vmem:[%s3226_s0] sm:$0xff] (!%p1927_p5)   ;;  %v2396_v7 = vld [vmem:[%s3227_s1 + $0x28] sm:$0xff] (!%p1927_p5)  }
  0x18   : > { %2094 = vmatpush3.bf16.msra.mxu0 (!%p1927_p5), %v2391_v1  ;;  %2109 = vmatprep.mubr.bf16.mxu0 (!%p1927_p5), %v2399_v5  ;;  %v2395_v6 = vld [vmem:[%s3227_s1 + $0x20] sm:$0xff] (!%p1927_p5)   ;;  %v611_v9 = vld [vmem:[%s3228_s2 + $0x8] sm:$0xff] (!%p1927_p5)  ;;  %v612_v10 = vld [vmem:[%s3228_s2 + $0x10] sm:$0xff] (!%p1927_p5) }
  0x19   : > { %2095 = vmatprep.subr.bf16.mxu0 (!%p1927_p5), %v2392_v2  ;;  %v610_v8 = vld [vmem:[%s3228_s2] sm:$0xff] (!%p1927_p5)  ;;  %v613_v12 = vld [vmem:[%s3228_s2 + $0x18] sm:$0xff] (!%p1927_p5)  ;;  %v615_v15 = vld [vmem:[%s3228_s2 + $0x28] sm:$0xff] (!%p1927_p5) }
  0x1a   : > { %v2269_v11 = vpack.c.bf16 (!%p1927_p5), %v611_v9, %v610_v8  ;;  %v2273_v13 = vpack.c.bf16 (!%p1927_p5), %v613_v12, %v612_v10  ;;  %v614_v14 = vld [vmem:[%s3228_s2 + $0x20] sm:$0xff] (!%p1927_p5)  ;;  %v2397_v16 = vld [vmem:[%s3227_s1 + $0x30] sm:$0xff] (!%p1927_p5)   ;;  %v617_v19 = vld [vmem:[%s3228_s2 + $0x38] sm:$0xff] (!%p1927_p5) }
  0x1b   : > { %v2277_v17 = vpack.c.bf16 (!%p1927_p5), %v615_v15, %v614_v14  ;;  %v616_v18 = vld [vmem:[%s3228_s2 + $0x30] sm:$0xff] (!%p1927_p5)  ;;  %v2398_v20 = vld [vmem:[%s3227_s1 + $0x38] sm:$0xff] (!%p1927_p5)   ;;  %v618_v22 = vld [vmem:[%s3228_s2 + $0x40] sm:$0xff] (!%p1927_p5) }
  0x1c   : > { %2096 = vmatpush3.bf16.msra.mxu0 (!%p1927_p5), %v2392_v2  ;;  %2270 = vmatprep.subr.bf16.mxu1 (!%p1927_p5), %v2269_v11  ;;  %v2281_v21 = vpack.c.bf16 (!%p1927_p5), %v617_v19, %v616_v18  ;;  %v619_v23 = vld [vmem:[%s3228_s2 + $0x48] sm:$0xff] (!%p1927_p5)  ;;  %v620_v26 = vld [vmem:[%s3228_s2 + $0x50] sm:$0xff] (!%p1927_p5)  ;;  %v621_v27 = vld [vmem:[%s3228_s2 + $0x58] sm:$0xff] (!%p1927_p5) }
  0x1d   : > { %2097 = vmatprep.subr.bf16.mxu0 (!%p1927_p5), %v2393_v3  ;;  %2272 = vmatpush3.bf16.msra.mxu1 (!%p1927_p5), %v2269_v11  ;;  %v2285_v24 = vpack.c.bf16 (!%p1927_p5), %v619_v23, %v618_v22  ;;  %v2400_v25 = vld [vmem:[%s3226_s0 + $0x8] sm:$0xff] (!%p1927_p5)   ;;  %v2401_v28 = vld [vmem:[%s3226_s0 + $0x10] sm:$0xff] (!%p1927_p5)   ;;  %v2289_v29 = vpack.c.bf16 (!%p1927_p5), %v621_v27, %v620_v26  ;;  %v622_v30 = vld [vmem:[%s3228_s2 + $0x60] sm:$0xff] (!%p1927_p5) }
  0x1e   : > { %2274 = vmatprep.subr.bf16.mxu1 %v2273_v13  ;;  %v623_v31 = vld [vmem:[%s3228_s2 + $0x68] sm:$0xff]  ;;  %v2402_v33 = vld [vmem:[%s3226_s0 + $0x18] sm:$0xff]   ;;  %v2403_v34 = vld [vmem:[%s3226_s0 + $0x20] sm:$0xff]  }
  0x1f   : > { %v2293_v32 = vpack.c.bf16 %v623_v31, %v622_v30  ;;  %v2404_v35 = vld [vmem:[%s3226_s0 + $0x28] sm:$0xff]   ;;  %v2405_v36 = vld [vmem:[%s3226_s0 + $0x30] sm:$0xff]   ;;  %v2406_v37 = vld [vmem:[%s3226_s0 + $0x38] sm:$0xff]  }
  0x20   : > { %2098 = vmatpush3.bf16.msra.mxu0 %v2393_v3  ;;  %v624_v38 = vld [vmem:[%s3228_s2 + $0x70] sm:$0xff]  ;;  %v625_v39 = vld [vmem:[%s3228_s2 + $0x78] sm:$0xff]  ;;  %v1959_v41 = vld [vmem:[%s3227_s1] sm:$0xff]  }
  0x21   : > { %2099 = vmatprep.subr.bf16.mxu0 %v2394_v4  ;;  %2276 = vmatpush3.bf16.msra.mxu1 %v2273_v13  ;;  %v2297_v40 = vpack.c.bf16 %v625_v39, %v624_v38  ;;  %v1990_v42 = vld [vmem:[%s3227_s1 + $0x8] sm:$0xff]   ;;  %v1960_v43 = vunpack.c.l.bf16 %v1959_v41  ;;  %v1961_v45 = vunpack.c.h.bf16 %v1959_v41  ;;  %v1991_v51 = vld [vmem:[%s3227_s1 + $0x10] sm:$0xff]   ;;  %v1992_v55 = vld [vmem:[%s3227_s1 + $0x18] sm:$0xff]  }
  0x22   : > { %2278 = vmatprep.subr.bf16.mxu1 %v2277_v17  ;;  %v1964_v46 = vunpack.c.l.bf16 %v1990_v42  ;;  %v1965_v52 = vunpack.c.h.bf16 %v1990_v42  ;;  %v1968_v56 = vunpack.c.l.bf16 %v1991_v51  ;;  %v1969_v59 = vunpack.c.h.bf16 %v1991_v51  ;;  %v1993_v1 = vld [vmem:[%s3227_s1 + $0x20] sm:$0xff]   ;;  %v1994_v5 = vld [vmem:[%s3227_s1 + $0x28] sm:$0xff]   ;;  %v1995_v15 = vld [vmem:[%s3227_s1 + $0x30] sm:$0xff]  }
  0x23   : > { %v1972_v60 = vunpack.c.l.bf16 %v1992_v55  ;;  %v1973_v2 = vunpack.c.h.bf16 %v1992_v55  ;;  %v1977_v9 = vunpack.c.h.bf16 %v1993_v1  ;;  %v1980_v10 = vunpack.c.l.bf16 %v1994_v5  ;;  %v1996_v19 = vld [vmem:[%s3227_s1 + $0x38] sm:$0xff]  }
  0x24   : > { %2100 = vmatpush3.bf16.msra.mxu0 %v2394_v4  ;;  %v1985_v23 = vunpack.c.h.bf16 %v1995_v15 }
  0x25   : > { %2101 = vmatprep.subr.bf16.mxu0 %v2395_v6  ;;  %2280 = vmatpush3.bf16.msra.mxu1 %v2277_v17 }
  0x26   : > { %2282 = vmatprep.subr.bf16.mxu1 %v2281_v21 }
  0x28   : > { %2102 = vmatpush3.bf16.msra.mxu0 %v2395_v6  ;;  %v1976_v6 = vunpack.c.l.bf16 %v1993_v1 }
  0x29   : > { %2103 = vmatprep.subr.bf16.mxu0 %v2396_v7  ;;  %2284 = vmatpush3.bf16.msra.mxu1 %v2281_v21 }
  0x2a   : > { %2286 = vmatprep.subr.bf16.mxu1 %v2285_v24 }
  0x2c   : > { %2104 = vmatpush3.bf16.msra.mxu0 %v2396_v7 }
  0x2d   : > { %2105 = vmatprep.subr.bf16.mxu0 %v2397_v16  ;;  %2288 = vmatpush3.bf16.msra.mxu1 %v2285_v24  ;;  %v1988_v24 = vunpack.c.l.bf16 %v1996_v19 }
  0x2e   : > { %2290 = vmatprep.subr.bf16.mxu1 %v2289_v29 }
  0x30   : > { %2106 = vmatpush3.bf16.msra.mxu0 %v2397_v16  ;;  %v1981_v16 = vunpack.c.h.bf16 %v1994_v5 }
  0x31   : > { %2107 = vmatprep.subr.bf16.mxu0 %v2398_v20  ;;  %2292 = vmatpush3.bf16.msra.mxu1 %v2289_v29  ;;  %v1989_v29 = vunpack.c.h.bf16 %v1996_v19 }
  0x32   : > { %2294 = vmatprep.subr.bf16.mxu1 %v2293_v32 }
  0x34   : > { %2108 = vmatpush3.bf16.msra.mxu0 %v2398_v20  ;;  %v1984_v20 = vunpack.c.l.bf16 %v1995_v15 }
  0x35   : > { %2296 = vmatpush3.bf16.msra.mxu1 %v2293_v32 }
  0x36   : > { %2298 = vmatprep.subr.bf16.mxu1 %v2297_v40 }
  0x37   : > { %2110 = vmatmul.mubr.bf16.vlgmr.msra.gmra.mrb[0].mxu0 %v2400_v25 }
  0x38   : > { %2113 = vmatprep.mubr.bf16.mxu0 %v2401_v28 }
  0x39   : > { %2300 = vmatpush3.bf16.msra.mxu1 %v2297_v40 }
  0x3f   : > { %2114 = vmatmul.mubr.bf16.gmra.mrb[4].mxu0 %v2402_v33  ;;  %v626_v33 = vlaneseq }
  0x40   : > { %2117 = vmatprep.mubr.bf16.mxu0 %v2403_v34 }
  0x41   : > { %v627_v34 = vshrl.u32 %v626_v33, 7 }
  0x47   : > { %2118 = vmatmul.mubr.bf16.gmra.mrb[8].mxu0 %v2404_v35  ;;  %v628_v35 = vsub.s32 0, %v627_v34 }
  0x48   : > { %2121 = vmatprep.mubr.bf16.mxu0 %v2405_v36  ;;  %v609_v36 = vld [vmem:[%s3229_s3] sm:$0x7] }
  0x4f   : > { %2122 = vmatmul.mubr.bf16.gmra.mrb[12].mxu0 %v2406_v37  ;;  %v2689_v37 = vrot.slane %v609_v36, %v628_v35 }
 0x10a   : > { %v2111_v44 = vpop.f32.mrb[0].mxu0 }
 0x10b   : > { %v546_v47 = vpop.f32.mrb[1].mxu0  ;;  %v555_v54 = vadd.f32 %v2111_v44, %v1964_v46 }
 0x10c   : > { %v2112_v48 = vpop.f32.mrb[2].mxu0  ;;  %v547_v49 = vadd.f32 %v1960_v43, %v546_v47 }
 0x10d   : > { %v549_v50 = vpop.f32.mrb[3].mxu0  ;;  %v558_v57 = vadd.f32 %v2112_v48, %v1965_v52 }
 0x10e   : > { %v550_v53 = vadd.f32 %v1961_v45, %v549_v50  ;;  %2157 = vmatprep.mubr.f32.mxu1 %v547_v49 }
 0x110   : > { %2158 = vmatmul.mubr.f32.vlgmr.msra.gmra.mrb[0].mxu1 %v550_v53 }
 0x111   : > { %2160 = vmatprep.mubr.f32.mxu1 %v555_v54 }
 0x112   : > { %v2115_v58 = vpop.f32.mrb[4].mxu0 }
 0x113   : > { %v562_v61 = vpop.f32.mrb[5].mxu0  ;;  %v571_v4 = vadd.f32 %v2115_v58, %v1972_v60 }
 0x114   : > { %v563_v62 = vadd.f32 %v1968_v56, %v562_v61  ;;  %v2116_v63 = vpop.f32.mrb[6].mxu0  ;;  %2161 = vmatmul.mubr.f32.gmra.mrb[2].mxu1 %v558_v57 }
 0x115   : > { %v565_v0 = vpop.f32.mrb[7].mxu0  ;;  %v574_v7 = vadd.f32 %v2116_v63, %v1973_v2 }
 0x116   : > { %v566_v3 = vadd.f32 %v1969_v59, %v565_v0  ;;  %2163 = vmatprep.mubr.f32.mxu1 %v563_v62 }
 0x118   : > { %2164 = vmatmul.mubr.f32.gmra.mrb[4].mxu1 %v566_v3 }
 0x119   : > { %2166 = vmatprep.mubr.f32.mxu1 %v571_v4 }
 0x11a   : > { %v2119_v8 = vpop.f32.mrb[8].mxu0 }
 0x11b   : > { %v578_v11 = vpop.f32.mrb[9].mxu0  ;;  %v587_v18 = vadd.f32 %v2119_v8, %v1980_v10 }
 0x11c   : > { %v579_v12 = vadd.f32 %v1976_v6, %v578_v11  ;;  %v2120_v13 = vpop.f32.mrb[10].mxu0  ;;  %2167 = vmatmul.mubr.f32.gmra.mrb[6].mxu1 %v574_v7 }
 0x11d   : > { %v581_v14 = vpop.f32.mrb[11].mxu0  ;;  %v590_v21 = vadd.f32 %v2120_v13, %v1981_v16 }
 0x11e   : > { %v582_v17 = vadd.f32 %v1977_v9, %v581_v14  ;;  %2169 = vmatprep.mubr.f32.mxu1 %v579_v12 }
 0x120   : > { %2170 = vmatmul.mubr.f32.gmra.mrb[8].mxu1 %v582_v17 }
 0x121   : > { %2172 = vmatprep.mubr.f32.mxu1 %v587_v18 }
 0x122   : > { %v2123_v22 = vpop.f32.mrb[12].mxu0 }
 0x123   : > { %v594_v25 = vpop.f32.mrb[13].mxu0  ;;  %v603_v31 = vadd.f32 %v2123_v22, %v1988_v24 }
 0x124   : > { %v595_v26 = vadd.f32 %v1984_v20, %v594_v25  ;;  %v2124_v27 = vpop.f32.mrb[14].mxu0  ;;  %2173 = vmatmul.mubr.f32.gmra.mrb[10].mxu1 %v590_v21 }
 0x125   : > { %v597_v28 = vpop.f32.mrb[15].mxu0  ;;  %v606_v32 = vadd.f32 %v2124_v27, %v1989_v29 }
 0x126   : > { %v598_v30 = vadd.f32 %v1985_v23, %v597_v28  ;;  %2175 = vmatprep.mubr.f32.mxu1 %v595_v26 }
 0x128   : > { %2176 = vmatmul.mubr.f32.gmra.mrb[12].mxu1 %v598_v30 }
 0x129   : > { %2178 = vmatprep.mubr.f32.mxu1 %v603_v31 }
 0x12c   : > { %2179 = vmatmul.mubr.f32.gmra.mrb[14].mxu1 %v606_v32 }
 0x1e3   : > { %v2159_v38 = vpop.f32.mrb[0].mxu1 }
 0x1e4   : > { %v702_v39 = vadd.f32 %v2159_v38, %v2689_v37  ;;  %v696_v40 = vpop.f32.mrb[1].mxu1 }
 0x1e5   : > { %v697_v41 = vadd.f32 %v696_v40, %v2689_v37 }
 0x1e6   : > { %777 = vst [vmem:[#allocation2 + $0x8] sm:$0xff] %v702_v39  ;;  %v834_v42 = vmul.f32 %v702_v39, %v702_v39 }
 0x1e7   : > { %776 = vst [vmem:[#allocation2] sm:$0xff] %v697_v41  ;;  %v809_v43 = vadd.f32 %v702_v39, %v697_v41  ;;  %v833_v44 = vmul.f32 %v697_v41, %v697_v41  ;;  %v2162_v45 = vpop.f32.mrb[2].mxu1 }
 0x1e8   : > { %v712_v46 = vadd.f32 %v2162_v45, %v2689_v37  ;;  %v706_v47 = vpop.f32.mrb[3].mxu1 }
 0x1e9   : > { %v849_v48 = vadd.f32 %v834_v42, %v833_v44  ;;  %v707_v49 = vadd.f32 %v706_v47, %v2689_v37 }
 0x1ea   : > { %v795_v50 = vmul.f32 0.0, %v712_v46 }
 0x1eb   : > { %v794_v51 = vmul.f32 0.0, %v707_v49  ;;  %v2165_v52 = vpop.f32.mrb[4].mxu1 }
 0x1ec   : > { %v722_v53 = vadd.f32 %v2165_v52, %v2689_v37  ;;  %v716_v54 = vpop.f32.mrb[5].mxu1  ;;  %v836_v59 = vmul.f32 %v795_v50, %v795_v50 }
 0x1ed   : > { %v810_v55 = vadd.f32 %v809_v43, %v794_v51  ;;  %v835_v56 = vmul.f32 %v794_v51, %v794_v51  ;;  %v717_v57 = vadd.f32 %v716_v54, %v2689_v37 }
 0x1ee   : > { %v797_v58 = vmul.f32 0.0, %v722_v53 }
 0x1ef   : > { %v850_v60 = vadd.f32 %v849_v48, %v835_v56  ;;  %v796_v61 = vmul.f32 0.0, %v717_v57  ;;  %v811_v62 = vadd.f32 %v810_v55, %v795_v50  ;;  %v2168_v63 = vpop.f32.mrb[6].mxu1 }
 0x1f0   : > { %v732_v0 = vadd.f32 %v2168_v63, %v2689_v37  ;;  %v726_v1 = vpop.f32.mrb[7].mxu1  ;;  %v838_v6 = vmul.f32 %v797_v58, %v797_v58 }
 0x1f1   : > { %v812_v2 = vadd.f32 %v811_v62, %v796_v61  ;;  %v837_v3 = vmul.f32 %v796_v61, %v796_v61  ;;  %v851_v4 = vadd.f32 %v850_v60, %v836_v59  ;;  %v727_v5 = vadd.f32 %v726_v1, %v2689_v37 }
 0x1f2   : > { %v799_v8 = vmul.f32 0.0, %v732_v0 }
 0x1f3   : > { %v852_v7 = vadd.f32 %v851_v4, %v837_v3  ;;  %v798_v9 = vmul.f32 0.0, %v727_v5  ;;  %v813_v10 = vadd.f32 %v812_v2, %v797_v58  ;;  %v2171_v11 = vpop.f32.mrb[8].mxu1 }
 0x1f4   : > { %v742_v12 = vadd.f32 %v2171_v11, %v2689_v37  ;;  %v736_v13 = vpop.f32.mrb[9].mxu1  ;;  %v840_v19 = vmul.f32 %v799_v8, %v799_v8  ;;  %v808_v11 = vld [vmem:[#allocation5] sm:$0x1] }
 0x1f5   : > { %v814_v14 = vadd.f32 %v813_v10, %v798_v9  ;;  %v839_v15 = vmul.f32 %v798_v9, %v798_v9  ;;  %v853_v16 = vadd.f32 %v852_v7, %v838_v6  ;;  %v737_v17 = vadd.f32 %v736_v13, %v2689_v37 }
 0x1f6   : > { %v801_v18 = vmul.f32 0.0, %v742_v12 }
 0x1f7   : > { %v854_v20 = vadd.f32 %v853_v16, %v839_v15  ;;  %v800_v21 = vmul.f32 0.0, %v737_v17  ;;  %v815_v22 = vadd.f32 %v814_v14, %v799_v8  ;;  %v2174_v23 = vpop.f32.mrb[10].mxu1  ;;  %v832_v14 = vld [vmem:[#allocation6] sm:$0x1] }
 0x1f8   : > { %v752_v24 = vadd.f32 %v2174_v23, %v2689_v37  ;;  %v746_v25 = vpop.f32.mrb[11].mxu1  ;;  %v842_v30 = vmul.f32 %v801_v18, %v801_v18 }
 0x1f9   : > { %v816_v26 = vadd.f32 %v815_v22, %v800_v21  ;;  %v841_v27 = vmul.f32 %v800_v21, %v800_v21  ;;  %v855_v28 = vadd.f32 %v854_v20, %v840_v19  ;;  %v747_v29 = vadd.f32 %v746_v25, %v2689_v37 }
 0x1fa   : > { %v803_v32 = vmul.f32 0.0, %v752_v24 }
 0x1fb   : > { %v856_v31 = vadd.f32 %v855_v28, %v841_v27  ;;  %v802_v33 = vmul.f32 0.0, %v747_v29  ;;  %v817_v34 = vadd.f32 %v816_v26, %v801_v18  ;;  %v2177_v35 = vpop.f32.mrb[12].mxu1 }
 0x1fc   : > { %v762_v36 = vadd.f32 %v2177_v35, %v2689_v37  ;;  %v756_v38 = vpop.f32.mrb[13].mxu1  ;;  %v844_v44 = vmul.f32 %v803_v32, %v803_v32 }
 0x1fd   : > { %v818_v39 = vadd.f32 %v817_v34, %v802_v33  ;;  %v843_v40 = vmul.f32 %v802_v33, %v802_v33  ;;  %v857_v41 = vadd.f32 %v856_v31, %v842_v30  ;;  %v757_v42 = vadd.f32 %v756_v38, %v2689_v37 }
 0x1fe   : > { %v805_v43 = vmul.f32 0.0, %v762_v36 }
 0x1ff   : > { %v858_v45 = vadd.f32 %v857_v41, %v843_v40  ;;  %v804_v46 = vmul.f32 0.0, %v757_v42  ;;  %v819_v47 = vadd.f32 %v818_v39, %v803_v32  ;;  %v2180_v48 = vpop.f32.mrb[14].mxu1 }
 0x200   : > { %v772_v49 = vadd.f32 %v2180_v48, %v2689_v37  ;;  %v766_v50 = vpop.f32.mrb[15].mxu1  ;;  %v846_v55 = vmul.f32 %v805_v43, %v805_v43 }
 0x201   : > { %v820_v51 = vadd.f32 %v819_v47, %v804_v46  ;;  %v845_v52 = vmul.f32 %v804_v46, %v804_v46  ;;  %v859_v53 = vadd.f32 %v858_v45, %v844_v44  ;;  %v767_v54 = vadd.f32 %v766_v50, %v2689_v37 }
 0x202   : > { %v807_v57 = vmul.f32 0.0, %v772_v49 }
 0x203   : > { %v860_v56 = vadd.f32 %v859_v53, %v845_v52  ;;  %v806_v58 = vmul.f32 0.0, %v767_v54  ;;  %v821_v59 = vadd.f32 %v820_v51, %v805_v43 }
 0x204   : > { %v848_v63 = vmul.f32 %v807_v57, %v807_v57 }
 0x205   : > { %v822_v60 = vadd.f32 %v821_v59, %v806_v58  ;;  %v847_v61 = vmul.f32 %v806_v58, %v806_v58  ;;  %v861_v62 = vadd.f32 %v860_v56, %v846_v55 }
 0x207   : > { %v823_v0 = vadd.f32 %v822_v60, %v807_v57  ;;  %v862_v1 = vadd.f32 %v861_v62, %v847_v61 }
 0x209   : > { %v824_v2 = vrot.slane %v823_v0, 4  ;;  %v863_v3 = vadd.f32 %v862_v1, %v848_v63 }
 0x20b   : > { %v825_v4 = vadd.f32 %v824_v2, %v823_v0  ;;  %v864_v5 = vrot.slane %v863_v3, 4 }
 0x20d   : > { %v826_v6 = vrot.slane %v825_v4, 2  ;;  %v865_v7 = vadd.f32 %v864_v5, %v863_v3 }
 0x20f   : > { %v827_v8 = vadd.f32 %v826_v6, %v825_v4  ;;  %v866_v9 = vrot.slane %v865_v7, 2 }
 0x211   : > { %v828_v37 = vrot.slane %v827_v8, 1  ;;  %v867_v10 = vadd.f32 %v866_v9, %v865_v7 }
 0x213   : > { %v829_v12 = vadd.f32 %v828_v37, %v827_v8  ;;  %v868_v13 = vrot.slane %v867_v10, 1 }
 0x215   : > { %v830_v15 = vadd.f32 %v829_v12, %v808_v11  ;;  %v869_v16 = vadd.f32 %v868_v13, %v867_v10 }
 0x217   : > { %831 = vst [vmem:[#allocation5] sm:$0x1] %v830_v15  ;;  %v870_v17 = vadd.f32 %v869_v16, %v832_v14 }
 0x219   : > { %871 = vst [vmem:[#allocation6] sm:$0x1] %v870_v17 }
 0x21a PF: > { %p872_p6 = scmp.eq.s32.totalorder %s2497_s21, 1 }
 0x21b   : > { %v1067_v18 = vld [vmem:[%s3230_s4] sm:$0xff] (%p872_p6)  ;;  %v1068_v19 = vld [vmem:[%s3230_s4 + $0x8] sm:$0xff] (%p872_p6)  ;;  %v1069_v20 = vld [vmem:[%s3230_s4 + $0x10] sm:$0xff] (%p872_p6)  ;;  %v2508_v23 = vmov (%p872_p6), 0.0   ;;  %v904_v36 = vlaneseq (%p872_p6) }
 0x21c   : > { %876 = sbr.rel (!%p872_p6) target bundleno = 803 (0x323), region = 56  ;;  %v2301_v21 = vpack.c.bf16 (%p872_p6), %v1068_v19, %v1067_v18  ;;  %v1070_v22 = vld [vmem:[%s3230_s4 + $0x18] sm:$0xff] (%p872_p6)  ;;  %2225 = vmatprep.mubr.f32.mxu1 (%p872_p6), %v2508_v23  ;;  %v1071_v25 = vld [vmem:[%s3230_s4 + $0x20] sm:$0xff] (%p872_p6)  ;;  %v1072_v26 = vld [vmem:[%s3230_s4 + $0x28] sm:$0xff] (%p872_p6) }
 0x21d   : > { %v2305_v24 = vpack.c.bf16 (%p872_p6), %v1070_v22, %v1069_v20  ;;  %v2309_v27 = vpack.c.bf16 (%p872_p6), %v1072_v26, %v1071_v25  ;;  %v1073_v29 = vld [vmem:[%s3230_s4 + $0x30] sm:$0xff] (%p872_p6)  ;;  %v1074_v30 = vld [vmem:[%s3230_s4 + $0x38] sm:$0xff] (%p872_p6)  ;;  %v1075_v38 = vld [vmem:[%s3230_s4 + $0x40] sm:$0xff] (%p872_p6)  ;;  %v905_v43 = vshrl.u32 (%p872_p6), %v904_v36, 7 }
 0x21e   : > { %2302 = vmatprep.subr.bf16.mxu0 (%p872_p6), %v2301_v21  ;;  %2333 = vmatprep.subr.bf16.mxu1 (%p872_p6), %v2301_v21  ;;  %v878_v28 = vld [vmem:[#allocation5] sm:$0x1] (%p872_p6)  ;;  %v2313_v35 = vpack.c.bf16 (%p872_p6), %v1074_v30, %v1073_v29  ;;  %v1076_v39 = vld [vmem:[%s3230_s4 + $0x48] sm:$0xff] (%p872_p6)  ;;  %v1077_v44 = vld [vmem:[%s3230_s4 + $0x50] sm:$0xff] (%p872_p6) }
 0x21f   : > { %2304 = vmatpush3.bf16.msra.mxu0 (%p872_p6), %v2301_v21  ;;  %2341 = vmatpush3.bf16.msra.mxu1 (%p872_p6), %v2301_v21  ;;  %v879_v31 = vmul.f32 (%p872_p6), 0.0625, %v878_v28  ;;  %v2317_v42 = vpack.c.bf16 (%p872_p6), %v1076_v39, %v1075_v38  ;;  %v1078_v45 = vld [vmem:[%s3230_s4 + $0x58] sm:$0xff] (%p872_p6)  ;;  %v906_v48 = vsub.s32 (%p872_p6), 0, %v905_v43  ;;  %v1079_v49 = vld [vmem:[%s3230_s4 + $0x60] sm:$0xff] (%p872_p6)  ;;  %v1080_v50 = vld [vmem:[%s3230_s4 + $0x68] sm:$0xff] (%p872_p6)  ;;  %v949_v57 = vsub.s32 (%p872_p6), 1, %v905_v43 }
 0x220   : > { %2306 = vmatprep.subr.bf16.mxu0 (%p872_p6), %v2305_v24  ;;  %2334 = vmatprep.subr.bf16.mxu1 (%p872_p6), %v2305_v24  ;;  %v880_v32 = vld [vmem:[#allocation6] sm:$0x1] (%p872_p6)  ;;  %v2321_v47 = vpack.c.bf16 (%p872_p6), %v1078_v45, %v1077_v44  ;;  %v2325_v51 = vpack.c.bf16 (%p872_p6), %v1080_v50, %v1079_v49  ;;  %v1081_v52 = vld [vmem:[%s3230_s4 + $0x70] sm:$0xff] (%p872_p6)  ;;  %v1082_v54 = vld [vmem:[%s3230_s4 + $0x78] sm:$0xff] (%p872_p6)  ;;  %v969_v61 = vsub.s32 (%p872_p6), 2, %v905_v43 }
 0x221   : > { %v881_v33 = vmul.f32 (%p872_p6), 0.0625, %v880_v32  ;;  %v882_v34 = vmul.f32 (%p872_p6), %v879_v31, %v879_v31  ;;  %v907_v53 = vrot.slane (%p872_p6), %v879_v31, %v906_v48  ;;  %v887_v55 = vld [vmem:[#allocation2] sm:$0xff] (%p872_p6)  ;;  %v888_v56 = vld [vmem:[#allocation2 + $0x8] sm:$0xff] (%p872_p6)  ;;  %v2329_v59 = vpack.c.bf16 (%p872_p6), %v1082_v54, %v1081_v52 }
 0x222   : > { %v877_v58 = vld [vmem:[%s3229_s3] sm:$0x7] (%p872_p6) }
 0x223   : > { %2308 = vmatpush3.bf16.msra.mxu0 %v2305_v24  ;;  %2342 = vmatpush3.bf16.msra.mxu1 %v2305_v24  ;;  %v883_v40 = vsub.f32 %v881_v33, %v882_v34  ;;  %v909_v60 = vsub.f32 %v887_v55, %v907_v53  ;;  %v910_v62 = vsub.f32 %v888_v56, %v907_v53 }
 0x224   : > { %2310 = vmatprep.subr.bf16.mxu0 %v2309_v27  ;;  %2335 = vmatprep.subr.bf16.mxu1 %v2309_v27  ;;  %v950_v1 = vrot.slane %v877_v58, %v949_v57  ;;  %v970_v3 = vrot.slane %v877_v58, %v969_v61 }
 0x225   : > { %v884_v41 = vmax.f32 %v883_v40, 0.0 }
 0x227   : > { %2312 = vmatpush3.bf16.msra.mxu0 %v2309_v27  ;;  %2343 = vmatpush3.bf16.msra.mxu1 %v2309_v27  ;;  %v885_v46 = vadd.f32 1e-05, %v884_v41 }
 0x228   : > { %2314 = vmatprep.subr.bf16.mxu0 %v2313_v35  ;;  %2336 = vmatprep.subr.bf16.mxu1 %v2313_v35 }
 0x229   : > { %2407 = vrsqrt.f32 %v885_v46 }
 0x22b   : > { %2316 = vmatpush3.bf16.msra.mxu0 %v2313_v35  ;;  %2344 = vmatpush3.bf16.msra.mxu1 %v2313_v35 }
 0x22c   : > { %2318 = vmatprep.subr.bf16.mxu0 %v2317_v42  ;;  %2337 = vmatprep.subr.bf16.mxu1 %v2317_v42 }
 0x22f   : > { %2320 = vmatpush3.bf16.msra.mxu0 %v2317_v42  ;;  %2345 = vmatpush3.bf16.msra.mxu1 %v2317_v42 }
 0x230   : > { %2322 = vmatprep.subr.bf16.mxu0 %v2321_v47  ;;  %2338 = vmatprep.subr.bf16.mxu1 %v2321_v47 }
 0x233   : > { %2324 = vmatpush3.bf16.msra.mxu0 %v2321_v47  ;;  %2346 = vmatpush3.bf16.msra.mxu1 %v2321_v47  ;;  %v2408_v63 = vpop.eup %2407 }
 0x234   : > { %2326 = vmatprep.subr.bf16.mxu0 %v2325_v51  ;;  %2339 = vmatprep.subr.bf16.mxu1 %v2325_v51  ;;  %v929_v0 = vrot.slane %v2408_v63, %v906_v48 }
 0x236   : > { %v931_v2 = vmul.f32 %v929_v0, %v909_v60  ;;  %v932_v4 = vmul.f32 %v929_v0, %v910_v62 }
 0x237   : > { %2328 = vmatpush3.bf16.msra.mxu0 %v2325_v51  ;;  %2347 = vmatpush3.bf16.msra.mxu1 %v2325_v51 }
 0x238   : > { %2330 = vmatprep.subr.bf16.mxu0 %v2329_v59  ;;  %2340 = vmatprep.subr.bf16.mxu1 %v2329_v59  ;;  %v951_v5 = vmul.f32 %v950_v1, %v931_v2  ;;  %v952_v6 = vmul.f32 %v950_v1, %v932_v4 }
 0x23a   : > { %v971_v7 = vadd.f32 %v970_v3, %v951_v5  ;;  %v972_v8 = vadd.f32 %v970_v3, %v952_v6 }
 0x23b   : > { %2332 = vmatpush3.bf16.msra.mxu0 %v2329_v59  ;;  %2348 = vmatpush3.bf16.msra.mxu1 %v2329_v59 }
 0x23c   : > { %v987_v9 = vmax.f32 %v971_v7, 0.0  ;;  %v988_v37 = vmax.f32 %v972_v8, 0.0 }
 0x23e   : > { %2226 = vmatmul.mubr.f32.vlgmr.msra.gmra.mrb[0].mxu1 %v2508_v23  ;;  %2213 = vmatprep.mubr.f32.mxu0 %v987_v9 }
 0x23f   : > { %2228 = vmatprep.mubr.f32.mxu1 %v2508_v23  ;;  %2214 = vmatmul.mubr.f32.vlgmr.msra.gmra.mrb[0].mxu0 %v988_v37 }
 0x240   : > { %2216 = vmatprep.mubr.f32.mxu0 %v2508_v23 }
 0x242   : > { %2229 = vmatmul.mubr.f32.gmra.mrb[2].mxu1 %v2508_v23 }
 0x243   : > { %2231 = vmatprep.mubr.f32.mxu1 %v2508_v23  ;;  %2217 = vmatmul.mubr.f32.gmra.mrb[2].mxu0 %v2508_v23 }
 0x244   : > { %2219 = vmatprep.mubr.f32.mxu0 %v2508_v23 }
 0x246   : > { %2232 = vmatmul.mubr.f32.gmra.mrb[4].mxu1 %v2508_v23 }
 0x247   : > { %2234 = vmatprep.mubr.f32.mxu1 %v2508_v23  ;;  %2220 = vmatmul.mubr.f32.gmra.mrb[4].mxu0 %v2508_v23 }
 0x248   : > { %2222 = vmatprep.mubr.f32.mxu0 %v2508_v23 }
 0x24a   : > { %2235 = vmatmul.mubr.f32.gmra.mrb[6].mxu1 %v2508_v23 }
 0x24b   : > { %2223 = vmatmul.mubr.f32.gmra.mrb[6].mxu0 %v2508_v23 }
 0x311   : > { %v2227_v10 = vpop.f32.mrb[0].mxu1 }
 0x312   : > { %1237 = vst [vmem:[#allocation3 + $0x48] sm:$0xff] %v2227_v10  ;;  %v1189_v11 = vpop.f32.mrb[1].mxu1  ;;  %v2215_v13 = vpop.f32.mrb[0].mxu0 }
 0x313   : > { %1236 = vst [vmem:[#allocation3 + $0x40] sm:$0xff] %v1189_v11  ;;  %v1248_v12 = vpack.c.bf16 %v2227_v10, %v1189_v11  ;;  %1229 = vst [vmem:[#allocation3 + $0x8] sm:$0xff] %v2215_v13  ;;  %v1149_v14 = vpop.f32.mrb[1].mxu0 }
 0x314   : > { %1228 = vst [vmem:[#allocation3] sm:$0xff] %v1149_v14  ;;  %v1244_v16 = vpack.c.bf16 %v2215_v13, %v1149_v14 }
 0x315   : > { %1256 = vst [vmem:[#allocation4 + $0x20] sm:$0xff] %v1248_v12  ;;  %v2230_v15 = vpop.f32.mrb[2].mxu1 }
 0x316   : > { %1239 = vst [vmem:[#allocation3 + $0x58] sm:$0xff] %v2230_v15  ;;  %v1199_v17 = vpop.f32.mrb[3].mxu1  ;;  %1252 = vst [vmem:[#allocation4] sm:$0xff] %v1244_v16  ;;  %v2218_v19 = vpop.f32.mrb[2].mxu0 }
 0x317   : > { %1238 = vst [vmem:[#allocation3 + $0x50] sm:$0xff] %v1199_v17  ;;  %v1249_v18 = vpack.c.bf16 %v2230_v15, %v1199_v17  ;;  %1231 = vst [vmem:[#allocation3 + $0x18] sm:$0xff] %v2218_v19  ;;  %v1159_v20 = vpop.f32.mrb[3].mxu0 }
 0x318   : > { %1230 = vst [vmem:[#allocation3 + $0x10] sm:$0xff] %v1159_v20  ;;  %v1245_v22 = vpack.c.bf16 %v2218_v19, %v1159_v20 }
 0x319   : > { %1257 = vst [vmem:[#allocation4 + $0x28] sm:$0xff] %v1249_v18  ;;  %v2233_v21 = vpop.f32.mrb[4].mxu1 }
 0x31a   : > { %1241 = vst [vmem:[#allocation3 + $0x68] sm:$0xff] %v2233_v21  ;;  %v1209_v23 = vpop.f32.mrb[5].mxu1  ;;  %1253 = vst [vmem:[#allocation4 + $0x8] sm:$0xff] %v1245_v22  ;;  %v2221_v25 = vpop.f32.mrb[4].mxu0 }
 0x31b   : > { %1240 = vst [vmem:[#allocation3 + $0x60] sm:$0xff] %v1209_v23  ;;  %v1250_v24 = vpack.c.bf16 %v2233_v21, %v1209_v23  ;;  %1233 = vst [vmem:[#allocation3 + $0x28] sm:$0xff] %v2221_v25  ;;  %v1169_v26 = vpop.f32.mrb[5].mxu0 }
 0x31c   : > { %1232 = vst [vmem:[#allocation3 + $0x20] sm:$0xff] %v1169_v26  ;;  %v1246_v28 = vpack.c.bf16 %v2221_v25, %v1169_v26 }
 0x31d   : > { %1258 = vst [vmem:[#allocation4 + $0x30] sm:$0xff] %v1250_v24  ;;  %v2236_v27 = vpop.f32.mrb[6].mxu1 }
 0x31e   : > { %1243 = vst [vmem:[#allocation3 + $0x78] sm:$0xff] %v2236_v27  ;;  %v1219_v29 = vpop.f32.mrb[7].mxu1  ;;  %1254 = vst [vmem:[#allocation4 + $0x10] sm:$0xff] %v1246_v28  ;;  %v2224_v31 = vpop.f32.mrb[6].mxu0 }
 0x31f   : > { %1242 = vst [vmem:[#allocation3 + $0x70] sm:$0xff] %v1219_v29  ;;  %v1251_v30 = vpack.c.bf16 %v2236_v27, %v1219_v29  ;;  %1235 = vst [vmem:[#allocation3 + $0x38] sm:$0xff] %v2224_v31  ;;  %v1179_v32 = vpop.f32.mrb[7].mxu0 }
 0x320   : > { %1234 = vst [vmem:[#allocation3 + $0x30] sm:$0xff] %v1179_v32  ;;  %v1247_v33 = vpack.c.bf16 %v2224_v31, %v1179_v32 }
 0x321   : > { %1259 = vst [vmem:[#allocation4 + $0x38] sm:$0xff] %v1251_v30 }
 0x322   : > { %1255 = vst [vmem:[#allocation4 + $0x18] sm:$0xff] %v1247_v33 }
 0x323 PF: > { %p1945_p7 = scmp.ne.s32.totalorder %s2497_s21, 1 }
 0x324   : > { %v1279_v34 = vld [vmem:[#allocation4] sm:$0xff] (!%p1945_p7)  ;;  %v1280_v35 = vld [vmem:[#allocation4 + $0x8] sm:$0xff] (!%p1945_p7)  ;;  %v1285_v43 = vld [vmem:[#allocation4 + $0x30] sm:$0xff] (!%p1945_p7)  ;;  %v1450_v51 = vlaneseq (!%p1945_p7) }
 0x325   : > { %1262 = sbr.rel (%p1945_p7) target bundleno = 1105 (0x451), region = 60  ;;  %2237 = vmatprep.subr.bf16.mxu0 (!%p1945_p7), %v1279_v34  ;;  %2349 = vmatprep.subr.bf16.mxu1 (!%p1945_p7), %v1279_v34  ;;  %v2409_v36 = vld [vmem:[%s3226_s0] sm:$0xff] (!%p1945_p7)   ;;  %v1281_v38 = vld [vmem:[#allocation4 + $0x10] sm:$0xff] (!%p1945_p7)  ;;  %v1284_v42 = vld [vmem:[#allocation4 + $0x28] sm:$0xff] (!%p1945_p7) }
 0x326   : > { %2238 = vmatpush3.bf16.msra.mxu0 (!%p1945_p7), %v1279_v34  ;;  %2357 = vmatpush3.bf16.msra.mxu1 (!%p1945_p7), %v1279_v34  ;;  %v2413_v39 = vld [vmem:[%s3226_s0 + $0x20] sm:$0xff] (!%p1945_p7)   ;;  %v2410_v45 = vld [vmem:[%s3226_s0 + $0x8] sm:$0xff] (!%p1945_p7)   ;;  %v2411_v47 = vld [vmem:[%s3226_s0 + $0x10] sm:$0xff] (!%p1945_p7)   ;;  %v1451_v52 = vshrl.u32 (!%p1945_p7), %v1450_v51, 7 }
 0x327   : > { %2239 = vmatprep.subr.bf16.mxu0 (!%p1945_p7), %v1280_v35  ;;  %2350 = vmatprep.subr.bf16.mxu1 (!%p1945_p7), %v1280_v35  ;;  %v1283_v41 = vld [vmem:[#allocation4 + $0x20] sm:$0xff] (!%p1945_p7)  ;;  %v2414_v46 = vld [vmem:[%s3226_s0 + $0x28] sm:$0xff] (!%p1945_p7)   ;;  %v2415_v48 = vld [vmem:[%s3226_s0 + $0x30] sm:$0xff] (!%p1945_p7)  }
 0x328   : > { %2253 = vmatprep.mubr.bf16.mxu0 (!%p1945_p7), %v2409_v36  ;;  %2261 = vmatprep.mubr.bf16.mxu1 (!%p1945_p7), %v2413_v39  ;;  %v1286_v44 = vld [vmem:[#allocation4 + $0x38] sm:$0xff] (!%p1945_p7)  ;;  %v1452_v53 = vsub.s32 (!%p1945_p7), 0, %v1451_v52  ;;  %v1449_v54 = vld [vmem:[%s3231_s5] sm:$0x7] (!%p1945_p7)  ;;  %v1290_v55 = vld [vmem:[#allocation3 + $0x10] sm:$0xff] (!%p1945_p7) }
 0x329   : > { %v1282_v40 = vld [vmem:[#allocation4 + $0x18] sm:$0xff] (!%p1945_p7)  ;;  %v1298_v56 = vld [vmem:[#allocation3 + $0x50] sm:$0xff] (!%p1945_p7)  ;;  %v1288_v58 = vld [vmem:[#allocation3] sm:$0xff] (!%p1945_p7) }
 0x32a   : > { %2240 = vmatpush3.bf16.msra.mxu0 (!%p1945_p7), %v1280_v35  ;;  %2358 = vmatpush3.bf16.msra.mxu1 (!%p1945_p7), %v1280_v35  ;;  %v2412_v49 = vld [vmem:[%s3226_s0 + $0x18] sm:$0xff] (!%p1945_p7)   ;;  %v2803_v57 = vrot.slane (!%p1945_p7), %v1449_v54, %v1452_v53  ;;  %v1296_v59 = vld [vmem:[#allocation3 + $0x40] sm:$0xff] (!%p1945_p7)  ;;  %v1289_v2 = vld [vmem:[#allocation3 + $0x8] sm:$0xff] (!%p1945_p7) }
 0x32b   : > { %2241 = vmatprep.subr.bf16.mxu0 (!%p1945_p7), %v1281_v38  ;;  %2351 = vmatprep.subr.bf16.mxu1 (!%p1945_p7), %v1281_v38  ;;  %v2416_v50 = vld [vmem:[%s3226_s0 + $0x38] sm:$0xff] (!%p1945_p7)   ;;  %v1297_v5 = vld [vmem:[#allocation3 + $0x48] sm:$0xff] (!%p1945_p7)  ;;  %v1294_v23 = vld [vmem:[#allocation3 + $0x30] sm:$0xff] (!%p1945_p7) }
 0x32c   : > { %v1291_v61 = vld [vmem:[#allocation3 + $0x18] sm:$0xff]  ;;  %v1302_v25 = vld [vmem:[#allocation3 + $0x70] sm:$0xff]  ;;  %v1292_v27 = vld [vmem:[#allocation3 + $0x20] sm:$0xff] }
 0x32d   : > { %v1299_v63 = vld [vmem:[#allocation3 + $0x58] sm:$0xff]  ;;  %v1300_v34 = vld [vmem:[#allocation3 + $0x60] sm:$0xff]  ;;  %v1293_v39 = vld [vmem:[#allocation3 + $0x28] sm:$0xff] }
 0x32e   : > { %2242 = vmatpush3.bf16.msra.mxu0 %v1281_v38  ;;  %2359 = vmatpush3.bf16.msra.mxu1 %v1281_v38  ;;  %v1295_v32 = vld [vmem:[#allocation3 + $0x38] sm:$0xff] }
 0x32f   : > { %2243 = vmatprep.subr.bf16.mxu0 %v1282_v40  ;;  %2352 = vmatprep.subr.bf16.mxu1 %v1282_v40  ;;  %v1303_v53 = vld [vmem:[#allocation3 + $0x78] sm:$0xff] }
 0x332   : > { %2244 = vmatpush3.bf16.msra.mxu0 %v1282_v40  ;;  %2360 = vmatpush3.bf16.msra.mxu1 %v1282_v40 }
 0x333   : > { %2245 = vmatprep.subr.bf16.mxu0 %v1283_v41  ;;  %2353 = vmatprep.subr.bf16.mxu1 %v1283_v41 }
 0x336   : > { %2246 = vmatpush3.bf16.msra.mxu0 %v1283_v41  ;;  %2361 = vmatpush3.bf16.msra.mxu1 %v1283_v41 }
 0x337   : > { %2247 = vmatprep.subr.bf16.mxu0 %v1284_v42  ;;  %2354 = vmatprep.subr.bf16.mxu1 %v1284_v42 }
 0x33a   : > { %2248 = vmatpush3.bf16.msra.mxu0 %v1284_v42  ;;  %2362 = vmatpush3.bf16.msra.mxu1 %v1284_v42 }
 0x33b   : > { %2249 = vmatprep.subr.bf16.mxu0 %v1285_v43  ;;  %2355 = vmatprep.subr.bf16.mxu1 %v1285_v43 }
 0x33e   : > { %2250 = vmatpush3.bf16.msra.mxu0 %v1285_v43  ;;  %2363 = vmatpush3.bf16.msra.mxu1 %v1285_v43 }
 0x33f   : > { %2251 = vmatprep.subr.bf16.mxu0 %v1286_v44  ;;  %2356 = vmatprep.subr.bf16.mxu1 %v1286_v44 }
 0x342   : > { %2252 = vmatpush3.bf16.msra.mxu0 %v1286_v44  ;;  %2364 = vmatpush3.bf16.msra.mxu1 %v1286_v44 }
 0x345   : > { %2254 = vmatmul.mubr.bf16.vlgmr.msra.gmra.mrb[0].mxu0 %v2410_v45  ;;  %2262 = vmatmul.mubr.bf16.vlgmr.msra.gmra.mrb[0].mxu1 %v2414_v46 }
 0x346   : > { %2257 = vmatprep.mubr.bf16.mxu0 %v2411_v47  ;;  %2265 = vmatprep.mubr.bf16.mxu1 %v2415_v48 }
 0x34d   : > { %2258 = vmatmul.mubr.bf16.gmra.mrb[4].mxu0 %v2412_v49  ;;  %2266 = vmatmul.mubr.bf16.gmra.mrb[4].mxu1 %v2416_v50 }
 0x418   : > { %v2255_v60 = vpop.f32.mrb[0].mxu0  ;;  %v2263_v62 = vpop.f32.mrb[0].mxu1 }
 0x419   : > { %v1395_v0 = vadd.f32 %v2255_v60, %v1290_v55  ;;  %v1386_v1 = vpop.f32.mrb[1].mxu0  ;;  %v1427_v3 = vadd.f32 %v2263_v62, %v1298_v56  ;;  %v1418_v4 = vpop.f32.mrb[1].mxu1 }
 0x41a   : > { %v1387_v6 = vadd.f32 %v1386_v1, %v1288_v58  ;;  %v2256_v7 = vpop.f32.mrb[2].mxu0  ;;  %v1419_v8 = vadd.f32 %v1418_v4, %v1296_v59  ;;  %v2264_v9 = vpop.f32.mrb[2].mxu1 }
 0x41b   : > { %v1456_v37 = vadd.f32 %v2803_v57, %v1395_v0  ;;  %v1398_v10 = vadd.f32 %v2256_v7, %v1291_v61  ;;  %v1389_v11 = vpop.f32.mrb[3].mxu0  ;;  %v2807_v12 = vadd.f32 %v2803_v57, %v1427_v3  ;;  %v1430_v13 = vadd.f32 %v2264_v9, %v1299_v63  ;;  %v1421_v14 = vpop.f32.mrb[3].mxu1 }
 0x41c   : > { %v1454_v15 = vadd.f32 %v2803_v57, %v1387_v6  ;;  %v1390_v16 = vadd.f32 %v1389_v11, %v1289_v2  ;;  %v2811_v17 = vadd.f32 %v2803_v57, %v1419_v8  ;;  %v1422_v18 = vadd.f32 %v1421_v14, %v1297_v5  ;;  %v1301_v2 = vld [vmem:[#allocation3 + $0x68] sm:$0xff] }
 0x41d   : > { %1473 = vst [vmem:[%s3232_s6 + $0x10] sm:$0xff] %v1456_v37  ;;  %v1489_v19 = vmul.f32 0.0, %v1456_v37  ;;  %v1457_v20 = vadd.f32 %v2803_v57, %v1398_v10  ;;  %1481 = vst [vmem:[%s3232_s6 + $0x50] sm:$0xff] %v2807_v12  ;;  %v2822_v21 = vadd.f32 %v2803_v57, %v1430_v13 }
 0x41e   : > { %1471 = vst [vmem:[%s3232_s6] sm:$0xff] %v1454_v15  ;;  %v1455_v22 = vadd.f32 %v2803_v57, %v1390_v16  ;;  %1479 = vst [vmem:[%s3232_s6 + $0x40] sm:$0xff] %v2811_v17  ;;  %v2833_v24 = vadd.f32 %v2803_v57, %v1422_v18  ;;  %v1528_v28 = vmul.f32 %v1454_v15, %v1454_v15  ;;  %v1495_v8 = vmul.f32 0.0, %v2811_v17 }
 0x41f   : > { %1474 = vst [vmem:[%s3232_s6 + $0x18] sm:$0xff] %v1457_v20  ;;  %v1490_v26 = vmul.f32 0.0, %v1457_v20  ;;  %1482 = vst [vmem:[%s3232_s6 + $0x58] sm:$0xff] %v2822_v21  ;;  %v1530_v35 = vmul.f32 %v1489_v19, %v1489_v19 }
 0x420   : > { %1472 = vst [vmem:[%s3232_s6 + $0x8] sm:$0xff] %v1455_v22  ;;  %v1504_v29 = vadd.f32 %v1455_v22, %v1454_v15  ;;  %v1529_v30 = vmul.f32 %v1455_v22, %v1455_v22  ;;  %v2259_v31 = vpop.f32.mrb[4].mxu0  ;;  %1480 = vst [vmem:[%s3232_s6 + $0x48] sm:$0xff] %v2833_v24  ;;  %v2267_v33 = vpop.f32.mrb[4].mxu1 }
 0x421   : > { %v1411_v36 = vadd.f32 %v2259_v31, %v1294_v23  ;;  %v1402_v38 = vpop.f32.mrb[5].mxu0  ;;  %v1443_v40 = vadd.f32 %v2267_v33, %v1302_v25  ;;  %v1434_v41 = vpop.f32.mrb[5].mxu1  ;;  %v1531_v42 = vmul.f32 %v1490_v26, %v1490_v26  ;;  %v1496_v23 = vmul.f32 0.0, %v2833_v24 }
 0x422   : > { %v1505_v43 = vadd.f32 %v1504_v29, %v1489_v19  ;;  %v1544_v44 = vadd.f32 %v1529_v30, %v1528_v28  ;;  %v1403_v45 = vadd.f32 %v1402_v38, %v1292_v27  ;;  %v2260_v46 = vpop.f32.mrb[6].mxu0  ;;  %v2268_v47 = vpop.f32.mrb[6].mxu1  ;;  %v1435_v52 = vadd.f32 %v1434_v41, %v1300_v34 }
 0x423   : > { %v1460_v48 = vadd.f32 %v2803_v57, %v1411_v36  ;;  %v1414_v49 = vadd.f32 %v2260_v46, %v1295_v32  ;;  %v1405_v50 = vpop.f32.mrb[7].mxu0  ;;  %v1468_v51 = vadd.f32 %v2803_v57, %v1443_v40  ;;  %v1437_v54 = vpop.f32.mrb[7].mxu1  ;;  %v1446_v1 = vadd.f32 %v2268_v47, %v1303_v53 }
 0x424   : > { %v1545_v55 = vadd.f32 %v1544_v44, %v1530_v35  ;;  %v1458_v56 = vadd.f32 %v2803_v57, %v1403_v45  ;;  %v1506_v58 = vadd.f32 %v1505_v43, %v1490_v26  ;;  %v1406_v59 = vadd.f32 %v1405_v50, %v1293_v39 }
 0x425   : > { %1477 = vst [vmem:[%s3232_s6 + $0x30] sm:$0xff] %v1460_v48  ;;  %v1461_v60 = vadd.f32 %v2803_v57, %v1414_v49  ;;  %1485 = vst [vmem:[%s3232_s6 + $0x70] sm:$0xff] %v1468_v51  ;;  %v1466_v61 = vadd.f32 %v2803_v57, %v1435_v52  ;;  %v1493_v3 = vmul.f32 0.0, %v1460_v48  ;;  %v1469_v7 = vadd.f32 %v2803_v57, %v1446_v1  ;;  %v1527_v1 = vld [vmem:[#allocation8] sm:$0x1] }
 0x426   : > { %1475 = vst [vmem:[%s3232_s6 + $0x20] sm:$0xff] %v1458_v56  ;;  %v1491_v62 = vmul.f32 0.0, %v1458_v56  ;;  %v1546_v63 = vadd.f32 %v1545_v55, %v1531_v42  ;;  %v1459_v0 = vadd.f32 %v2803_v57, %v1406_v59  ;;  %v1438_v9 = vadd.f32 %v1437_v54, %v1301_v2 }
 0x427   : > { %1478 = vst [vmem:[%s3232_s6 + $0x38] sm:$0xff] %v1461_v60  ;;  %1483 = vst [vmem:[%s3232_s6 + $0x60] sm:$0xff] %v1466_v61  ;;  %v1494_v10 = vmul.f32 0.0, %v1461_v60  ;;  %v1534_v15 = vmul.f32 %v1493_v3, %v1493_v3  ;;  %v1536_v19 = vmul.f32 %v1495_v8, %v1495_v8  ;;  %v1497_v25 = vmul.f32 0.0, %v2807_v12 }
 0x428   : > { %v1507_v4 = vadd.f32 %v1506_v58, %v1491_v62  ;;  %v1532_v5 = vmul.f32 %v1491_v62, %v1491_v62  ;;  %1476 = vst [vmem:[%s3232_s6 + $0x28] sm:$0xff] %v1459_v0  ;;  %v1492_v6 = vmul.f32 0.0, %v1459_v0  ;;  %1486 = vst [vmem:[%s3232_s6 + $0x78] sm:$0xff] %v1469_v7  ;;  %v1467_v14 = vadd.f32 %v2803_v57, %v1438_v9  ;;  %v1503_v62 = vld [vmem:[#allocation7] sm:$0x1] }
 0x429   : > { %v1535_v17 = vmul.f32 %v1494_v10, %v1494_v10  ;;  %v1498_v28 = vmul.f32 0.0, %v2822_v21  ;;  %v1537_v30 = vmul.f32 %v1496_v23, %v1496_v23  ;;  %v1499_v31 = vmul.f32 0.0, %v1466_v61 }
 0x42a   : > { %v1547_v37 = vadd.f32 %v1546_v63, %v1532_v5  ;;  %v1508_v11 = vadd.f32 %v1507_v4, %v1492_v6  ;;  %v1533_v13 = vmul.f32 %v1492_v6, %v1492_v6  ;;  %1484 = vst [vmem:[%s3232_s6 + $0x68] sm:$0xff] %v1467_v14  ;;  %v1538_v32 = vmul.f32 %v1497_v25, %v1497_v25 }
 0x42b   : > { %v1539_v35 = vmul.f32 %v1498_v28, %v1498_v28  ;;  %v1540_v39 = vmul.f32 %v1499_v31, %v1499_v31  ;;  %v1500_v40 = vmul.f32 0.0, %v1467_v14  ;;  %v1501_v41 = vmul.f32 0.0, %v1468_v51 }
 0x42c   : > { %v1509_v16 = vadd.f32 %v1508_v11, %v1493_v3  ;;  %v1548_v18 = vadd.f32 %v1547_v37, %v1533_v13  ;;  %v1502_v43 = vmul.f32 0.0, %v1469_v7 }
 0x42d   : > { %v1541_v45 = vmul.f32 %v1500_v40, %v1500_v40  ;;  %v1542_v21 = vmul.f32 %v1501_v41, %v1501_v41 }
 0x42e   : > { %v1549_v20 = vadd.f32 %v1548_v18, %v1534_v15  ;;  %v1510_v22 = vadd.f32 %v1509_v16, %v1494_v10  ;;  %v1543_v48 = vmul.f32 %v1502_v43, %v1502_v43 }
 0x430   : > { %v1511_v26 = vadd.f32 %v1510_v22, %v1495_v8  ;;  %v1550_v27 = vadd.f32 %v1549_v20, %v1535_v17 }
 0x432   : > { %v1551_v57 = vadd.f32 %v1550_v27, %v1536_v19  ;;  %v1512_v29 = vadd.f32 %v1511_v26, %v1496_v23 }
 0x434   : > { %v1513_v33 = vadd.f32 %v1512_v29, %v1497_v25  ;;  %v1552_v34 = vadd.f32 %v1551_v57, %v1537_v30 }
 0x436   : > { %v1553_v36 = vadd.f32 %v1552_v34, %v1538_v32  ;;  %v1514_v38 = vadd.f32 %v1513_v33, %v1498_v28 }
 0x438   : > { %v1515_v24 = vadd.f32 %v1514_v38, %v1499_v31  ;;  %v1554_v42 = vadd.f32 %v1553_v36, %v1539_v35 }
 0x43a   : > { %v1555_v12 = vadd.f32 %v1554_v42, %v1540_v39  ;;  %v1516_v44 = vadd.f32 %v1515_v24, %v1500_v40 }
 0x43c   : > { %v1517_v46 = vadd.f32 %v1516_v44, %v1501_v41  ;;  %v1556_v47 = vadd.f32 %v1555_v12, %v1541_v45 }
 0x43e   : > { %v1518_v49 = vadd.f32 %v1517_v46, %v1502_v43  ;;  %v1557_v50 = vadd.f32 %v1556_v47, %v1542_v21 }
 0x440   : > { %v1519_v52 = vrot.slane %v1518_v49, 4  ;;  %v1558_v53 = vadd.f32 %v1557_v50, %v1543_v48 }
 0x442   : > { %v1520_v54 = vadd.f32 %v1519_v52, %v1518_v49  ;;  %v1559_v55 = vrot.slane %v1558_v53, 4 }
 0x444   : > { %v1521_v56 = vrot.slane %v1520_v54, 2  ;;  %v1560_v58 = vadd.f32 %v1559_v55, %v1558_v53 }
 0x446   : > { %v1522_v59 = vadd.f32 %v1521_v56, %v1520_v54  ;;  %v1561_v51 = vrot.slane %v1560_v58, 2 }
 0x448   : > { %v1523_v60 = vrot.slane %v1522_v59, 1  ;;  %v1562_v61 = vadd.f32 %v1561_v51, %v1560_v58 }
 0x44a   : > { %v1524_v63 = vadd.f32 %v1523_v60, %v1522_v59  ;;  %v1563_v0 = vrot.slane %v1562_v61, 1 }
 0x44c   : > { %v1525_v2 = vadd.f32 %v1524_v63, %v1503_v62  ;;  %v1564_v3 = vadd.f32 %v1563_v0, %v1562_v61 }
 0x44e   : > { %1526 = vst [vmem:[#allocation7] sm:$0x1] %v1525_v2  ;;  %v1565_v4 = vadd.f32 %v1564_v3, %v1527_v1 }
 0x450   : > { %1566 = vst [vmem:[#allocation8] sm:$0x1] %v1565_v4 }
 0x451 PF: > { %1568 = sbr.rel (!%p872_p6) target bundleno = 1487 (0x5cf), region = 64  ;;  %v1596_v37 = vlaneseq (%p872_p6)  ;;  %v1579_v16 = vld [vmem:[%s3232_s6] sm:$0xff] (%p872_p6)  ;;  %v1581_v19 = vld [vmem:[%s3232_s6 + $0x10] sm:$0xff] (%p872_p6)  ;;  %v1580_v17 = vld [vmem:[%s3232_s6 + $0x8] sm:$0xff] (%p872_p6) }
 0x452   : > { %v1582_v20 = vld [vmem:[%s3232_s6 + $0x18] sm:$0xff] (%p872_p6)  ;;  %v1583_v23 = vld [vmem:[%s3232_s6 + $0x20] sm:$0xff] (%p872_p6)  ;;  %v1584_v25 = vld [vmem:[%s3232_s6 + $0x28] sm:$0xff] (%p872_p6) }
 0x453   : > { %v1597_v13 = vshrl.u32 (%p872_p6), %v1596_v37, 7  ;;  %v1585_v26 = vld [vmem:[%s3232_s6 + $0x30] sm:$0xff] (%p872_p6)  ;;  %v1569_v27 = vld [vmem:[%s3231_s5] sm:$0x7] (%p872_p6)  ;;  %v2913_v57 = vand.u32 (%p872_p6), 127, %v1596_v37  ;;  %v1586_v33 = vld [vmem:[%s3232_s6 + $0x38] sm:$0xff] (%p872_p6) }
 0x454   : > { %v1587_v41 = vld [vmem:[%s3232_s6 + $0x40] sm:$0xff] (%p872_p6)  ;;  %v1588_v21 = vld [vmem:[%s3232_s6 + $0x48] sm:$0xff] (%p872_p6)  ;;  %v1589_v55 = vld [vmem:[%s3232_s6 + $0x50] sm:$0xff] (%p872_p6) }
 0x455   : > { %v1570_v5 = vld [vmem:[#allocation7] sm:$0x1] (%p872_p6)  ;;  %v1598_v15 = vsub.s32 (%p872_p6), 0, %v1597_v13  ;;  %v1641_v22 = vsub.s32 (%p872_p6), 1, %v1597_v13  ;;  %v1661_v28 = vsub.s32 (%p872_p6), 2, %v1597_v13  ;;  %vm1681_vm0 = vcmp.lt.s32.totalorder (%p872_p6), %v2913_v57, 8 }
 0x456   : > { %v1571_v7 = vmul.f32 (%p872_p6), 0.0625, %v1570_v5  ;;  %v1590_v60 = vld [vmem:[%s3232_s6 + $0x58] sm:$0xff] (%p872_p6)  ;;  %v1592_v37 = vld [vmem:[%s3232_s6 + $0x68] sm:$0xff] (%p872_p6) }
 0x457   : > { %v1572_v6 = vld [vmem:[#allocation8] sm:$0x1] (%p872_p6)  ;;  %v2927_v40 = vrot.slane (%p872_p6), %v1569_v27, %v1641_v22  ;;  %v2932_v24 = vrot.slane (%p872_p6), %v1569_v27, %v1661_v28 }
 0x458   : > { %v1573_v8 = vmul.f32 0.0625, %v1572_v6  ;;  %v1574_v9 = vmul.f32 %v1571_v7, %v1571_v7  ;;  %v2890_v18 = vrot.slane %v1571_v7, %v1598_v15 }
 0x45a   : > { %v1575_v10 = vsub.f32 %v1573_v8, %v1574_v9  ;;  %v1601_v29 = vsub.f32 %v1579_v16, %v2890_v18  ;;  %v1603_v30 = vsub.f32 %v1581_v19, %v2890_v18  ;;  %v1602_v31 = vsub.f32 %v1580_v17, %v2890_v18  ;;  %v1591_v9 = vld [vmem:[%s3232_s6 + $0x60] sm:$0xff] }
 0x45b   : > { %v1604_v32 = vsub.f32 %v1582_v20, %v2890_v18  ;;  %v1605_v35 = vsub.f32 %v1583_v23, %v2890_v18  ;;  %v1606_v36 = vsub.f32 %v1584_v25, %v2890_v18  ;;  %v1607_v38 = vsub.f32 %v1585_v26, %v2890_v18  ;;  %v1593_v23 = vld [vmem:[%s3232_s6 + $0x70] sm:$0xff]  ;;  %v1594_v25 = vld [vmem:[%s3232_s6 + $0x78] sm:$0xff] }
 0x45c   : > { %v1576_v11 = vmax.f32 %v1575_v10, 0.0  ;;  %v1608_v42 = vsub.f32 %v1586_v33, %v2890_v18  ;;  %v1609_v49 = vsub.f32 %v1587_v41, %v2890_v18  ;;  %v1610_v51 = vsub.f32 %v1588_v21, %v2890_v18 }
 0x45d   : > { %v1611_v1 = vsub.f32 %v1589_v55, %v2890_v18  ;;  %v1612_v5 = vsub.f32 %v1590_v60, %v2890_v18  ;;  %v1614_v16 = vsub.f32 %v1592_v37, %v2890_v18 }
 0x45e   : > { %v1577_v14 = vadd.f32 1e-05, %v1576_v11 }
 0x460   : > { %2417 = vrsqrt.f32 %v1577_v14 }
 0x46a   : > { %v2418_v34 = vpop.eup %2417 }
 0x46b   : > { %v2925_v39 = vrot.slane %v2418_v34, %v1598_v15  ;;  %v1613_v15 = vsub.f32 %v1591_v9, %v2890_v18 }
 0x46d   : > { %v1623_v12 = vmul.f32 %v2925_v39, %v1601_v29  ;;  %v1625_v43 = vmul.f32 %v2925_v39, %v1603_v30  ;;  %v1624_v44 = vmul.f32 %v2925_v39, %v1602_v31  ;;  %v1626_v45 = vmul.f32 %v2925_v39, %v1604_v32 }
 0x46e   : > { %v1627_v46 = vmul.f32 %v2925_v39, %v1605_v35  ;;  %v1628_v47 = vmul.f32 %v2925_v39, %v1606_v36  ;;  %v1629_v48 = vmul.f32 %v2925_v39, %v1607_v38  ;;  %v1630_v59 = vmul.f32 %v2925_v39, %v1608_v42 }
 0x46f   : > { %v1643_v50 = vmul.f32 %v2927_v40, %v1623_v12  ;;  %v1645_v52 = vmul.f32 %v2927_v40, %v1625_v43  ;;  %v1644_v53 = vmul.f32 %v2927_v40, %v1624_v44  ;;  %v1646_v54 = vmul.f32 %v2927_v40, %v1626_v45 }
 0x470   : > { %v1647_v56 = vmul.f32 %v2927_v40, %v1627_v46  ;;  %v1648_v58 = vmul.f32 %v2927_v40, %v1628_v47  ;;  %v1649_v4 = vmul.f32 %v2927_v40, %v1629_v48  ;;  %v1650_v7 = vmul.f32 %v2927_v40, %v1630_v59 }
 0x471   : > { %v1663_v61 = vadd.f32 %v2932_v24, %v1643_v50  ;;  %v1665_v62 = vadd.f32 %v2932_v24, %v1645_v52  ;;  %v1664_v63 = vadd.f32 %v2932_v24, %v1644_v53  ;;  %v1666_v0 = vadd.f32 %v2932_v24, %v1646_v54 }
 0x472   : > { %v1667_v6 = vadd.f32 %v2932_v24, %v1647_v56  ;;  %v1631_v8 = vmul.f32 %v2925_v39, %v1609_v49  ;;  %v1668_v13 = vadd.f32 %v2932_v24, %v1648_v58  ;;  %v1632_v14 = vmul.f32 %v2925_v39, %v1610_v51 }
 0x473   : > { %v2968_v2 = vsel %vm1681_vm0, %v1663_v61, -1e+30  ;;  %v2972_v3 = vsel %vm1681_vm0, %v1665_v62, -1e+30  ;;  %v2989_v10 = vsel %vm1681_vm0, %v1664_v63, -1e+30  ;;  %v1669_v17 = vadd.f32 %v2932_v24, %v1649_v4 }
 0x474   : > { %1698 = vmax.xlane.f32.xlu0 %v2968_v2  ;;  %1702 = vmax.xlane.f32.xlu1 %v2972_v3  ;;  %v2993_v11 = vsel %vm1681_vm0, %v1666_v0, -1e+30  ;;  %v3003_v19 = vsel %vm1681_vm0, %v1667_v6, -1e+30  ;;  %v1670_v20 = vadd.f32 %v2932_v24, %v1650_v7  ;;  %v1651_v22 = vmul.f32 %v2927_v40, %v1631_v8 }
 0x475   : > { %v3016_v26 = vsel %vm1681_vm0, %v1668_v13, -1e+30  ;;  %v1652_v27 = vmul.f32 %v2927_v40, %v1632_v14  ;;  %v1633_v28 = vmul.f32 %v2925_v39, %v1611_v1  ;;  %v1634_v29 = vmul.f32 %v2925_v39, %v1612_v5 }
 0x476   : > { %v1615_v30 = vsub.f32 %v1593_v23, %v2890_v18  ;;  %v1616_v31 = vsub.f32 %v1594_v25, %v2890_v18  ;;  %v3027_v32 = vsel %vm1681_vm0, %v1669_v17, -1e+30  ;;  %v3031_v33 = vsel %vm1681_vm0, %v1670_v20, -1e+30 }
 0x477   : > { %v1671_v34 = vadd.f32 %v2932_v24, %v1651_v22  ;;  %v1635_v35 = vmul.f32 %v2925_v39, %v1613_v15  ;;  %v1672_v36 = vadd.f32 %v2932_v24, %v1652_v27  ;;  %v1653_v18 = vmul.f32 %v2927_v40, %v1633_v28 }
 0x478   : > { %1700 = vmax.xlane.f32.xlu0 %v2989_v10  ;;  %1704 = vmax.xlane.f32.xlu1 %v2993_v11  ;;  %v1654_v38 = vmul.f32 %v2927_v40, %v1634_v29  ;;  %v1636_v41 = vmul.f32 %v2925_v39, %v1614_v16  ;;  %v1637_v43 = vmul.f32 %v2925_v39, %v1615_v30 }
 0x479   : > { %v3043_v42 = vsel %vm1681_vm0, %v1671_v34, -1e+30  ;;  %v1655_v12 = vmul.f32 %v2927_v40, %v1635_v35  ;;  %v1638_v44 = vmul.f32 %v2925_v39, %v1616_v31  ;;  %v1691_v45 = vsel %vm1681_vm0, %v1672_v36, -1e+30 }
 0x47a   : > { %v1673_v21 = vadd.f32 %v2932_v24, %v1653_v18  ;;  %v1674_v46 = vadd.f32 %v2932_v24, %v1654_v38  ;;  %v1656_v47 = vmul.f32 %v2927_v40, %v1636_v41  ;;  %v1657_v49 = vmul.f32 %v2927_v40, %v1637_v43 }
 0x47b   : > { %v1675_v48 = vadd.f32 %v2932_v24, %v1655_v12  ;;  %v1658_v53 = vmul.f32 %v2927_v40, %v1638_v44 }
 0x47c   : > { %1706 = vmax.xlane.f32.xlu0 %v3003_v19  ;;  %1708 = vmax.xlane.f32.xlu1 %v3016_v26  ;;  %v3058_v50 = vsel %vm1681_vm0, %v1673_v21, -1e+30  ;;  %v3062_v39 = vsel %vm1681_vm0, %v1674_v46, -1e+30  ;;  %v1676_v52 = vadd.f32 %v2932_v24, %v1656_v47  ;;  %v1677_v56 = vadd.f32 %v2932_v24, %v1657_v49 }
 0x47d   : > { %v3070_v54 = vsel %vm1681_vm0, %v1675_v48, -1e+30  ;;  %v1678_v58 = vadd.f32 %v2932_v24, %v1658_v53 }
 0x47e   : > { %v3074_v55 = vsel %vm1681_vm0, %v1676_v52, -1e+30  ;;  %v3082_v40 = vsel %vm1681_vm0, %v1677_v56, -1e+30 }
 0x47f   : > { %v3086_v59 = vsel %vm1681_vm0, %v1678_v58, -1e+30 }
 0x480   : > { %1710 = vmax.xlane.f32.xlu0 %v3027_v32  ;;  %1712 = vmax.xlane.f32.xlu1 %v3031_v33 }
 0x484   : > { %1714 = vmax.xlane.f32.xlu0 %v3043_v42  ;;  %1716 = vmax.xlane.f32.xlu1 %v1691_v45 }
 0x488   : > { %1718 = vmax.xlane.f32.xlu0 %v3058_v50  ;;  %1720 = vmax.xlane.f32.xlu1 %v3062_v39 }
 0x48c   : > { %1722 = vmax.xlane.f32.xlu0 %v3070_v54  ;;  %1724 = vmax.xlane.f32.xlu1 %v3074_v55 }
 0x490   : > { %1726 = vmax.xlane.f32.xlu0 %v3082_v40  ;;  %1728 = vmax.xlane.f32.xlu1 %v3086_v59 }
 0x501   : > { %v1699_v51 = vpop.xlane.xlu0 %1698  ;;  %v1703_v60 = vpop.xlane.xlu1 %1702 }
 0x502   : > { %v3091_v24 = vsub.f32 %v2968_v2, %v1699_v51  ;;  %v3094_v61 = vsub.f32 %v2972_v3, %v1703_v60 }
 0x504   : > { %v1746_v62 = vmul.f32 1.442695, %v3091_v24  ;;  %v1750_v63 = vmul.f32 1.442695, %v3094_v61 }
 0x505   : > { %v1701_v0 = vpop.xlane.xlu0 %1700  ;;  %v1705_v57 = vpop.xlane.xlu1 %1704 }
 0x506   : > { %2419 = vpow2.f32 %v1746_v62  ;;  %v3099_v1 = vsub.f32 %v2989_v10, %v1701_v0  ;;  %v3102_v4 = vsub.f32 %v2993_v11, %v1705_v57 }
 0x507   : > { %2421 = vpow2.f32 %v1750_v63 }
 0x508   : > { %v1748_v2 = vmul.f32 1.442695, %v3099_v1  ;;  %v1752_v5 = vmul.f32 1.442695, %v3102_v4 }
 0x509   : > { %v1707_v3 = vpop.xlane.xlu0 %1706  ;;  %v1709_v6 = vpop.xlane.xlu1 %1708 }
 0x50a   : > { %2423 = vpow2.f32 %v1748_v2  ;;  %v3107_v7 = vsub.f32 %v3003_v19, %v1707_v3  ;;  %v3110_v8 = vsub.f32 %v3016_v26, %v1709_v6 }
 0x50b   : > { %2425 = vpow2.f32 %v1752_v5 }
 0x50c   : > { %v1754_v9 = vmul.f32 1.442695, %v3107_v7  ;;  %v1756_v37 = vmul.f32 1.442695, %v3110_v8 }
 0x50d   : > { %v1711_v10 = vpop.xlane.xlu0 %1710  ;;  %v1713_v11 = vpop.xlane.xlu1 %1712 }
 0x50e   : > { %2427 = vpow2.f32 %v1754_v9  ;;  %v3115_v13 = vsub.f32 %v3027_v32, %v1711_v10  ;;  %v3118_v14 = vsub.f32 %v3031_v33, %v1713_v11 }
 0x50f   : > { %2429 = vpow2.f32 %v1756_v37 }
 0x510   : > { %v2420_v15 = vpop.eup %2419  ;;  %v1758_v16 = vmul.f32 1.442695, %v3115_v13  ;;  %v1760_v19 = vmul.f32 1.442695, %v3118_v14 }
 0x511   : > { %1778 = vadd.xlane.f32.xlu0 %v2420_v15  ;;  %v1715_v17 = vpop.xlane.xlu0 %1714  ;;  %v1717_v20 = vpop.xlane.xlu1 %1716 }
 0x512   : > { %v2422_v22 = vpop.eup %2421  ;;  %2431 = vpow2.f32 %v1758_v16  ;;  %v3123_v23 = vsub.f32 %v3043_v42, %v1715_v17  ;;  %v3125_v25 = vsub.f32 %v1691_v45, %v1717_v20 }
 0x513   : > { %2433 = vpow2.f32 %v1760_v19 }
 0x514   : > { %v2424_v26 = vpop.eup %2423  ;;  %v1762_v27 = vmul.f32 1.442695, %v3123_v23  ;;  %v1764_v28 = vmul.f32 1.442695, %v3125_v25 }
 0x515   : > { %1782 = vadd.xlane.f32.xlu0 %v2422_v22  ;;  %1780 = vadd.xlane.f32.xlu1 %v2424_v26  ;;  %v1719_v29 = vpop.xlane.xlu0 %1718  ;;  %v1721_v30 = vpop.xlane.xlu1 %1720 }
 0x516   : > { %v2426_v31 = vpop.eup %2425  ;;  %2435 = vpow2.f32 %v1762_v27  ;;  %v3130_v32 = vsub.f32 %v3058_v50, %v1719_v29  ;;  %v3133_v33 = vsub.f32 %v3062_v39, %v1721_v30 }
 0x517   : > { %2437 = vpow2.f32 %v1764_v28 }
 0x518   : > { %v2428_v34 = vpop.eup %2427  ;;  %v1766_v35 = vmul.f32 1.442695, %v3130_v32  ;;  %v1768_v36 = vmul.f32 1.442695, %v3133_v33 }
 0x519   : > { %1784 = vadd.xlane.f32.xlu1 %v2426_v31  ;;  %1786 = vadd.xlane.f32.xlu0 %v2428_v34  ;;  %v1723_v18 = vpop.xlane.xlu0 %1722  ;;  %v1725_v38 = vpop.xlane.xlu1 %1724 }
 0x51a   : > { %v2430_v41 = vpop.eup %2429  ;;  %2439 = vpow2.f32 %v1766_v35  ;;  %v3138_v42 = vsub.f32 %v3070_v54, %v1723_v18  ;;  %v3141_v12 = vsub.f32 %v3074_v55, %v1725_v38 }
 0x51b   : > { %2441 = vpow2.f32 %v1768_v36 }
 0x51c   : > { %v2432_v43 = vpop.eup %2431  ;;  %v1770_v44 = vmul.f32 1.442695, %v3138_v42  ;;  %v1772_v45 = vmul.f32 1.442695, %v3141_v12 }
 0x51d   : > { %1788 = vadd.xlane.f32.xlu1 %v2430_v41  ;;  %1790 = vadd.xlane.f32.xlu0 %v2432_v43  ;;  %v1727_v21 = vpop.xlane.xlu0 %1726  ;;  %v1729_v46 = vpop.xlane.xlu1 %1728 }
 0x51e   : > { %v2434_v47 = vpop.eup %2433  ;;  %2443 = vpow2.f32 %v1770_v44  ;;  %v3146_v48 = vsub.f32 %v3082_v40, %v1727_v21  ;;  %v3149_v49 = vsub.f32 %v3086_v59, %v1729_v46 }
 0x51f   : > { %2445 = vpow2.f32 %v1772_v45 }
 0x520   : > { %v2436_v50 = vpop.eup %2435  ;;  %v1774_v39 = vmul.f32 1.442695, %v3146_v48  ;;  %v1776_v52 = vmul.f32 1.442695, %v3149_v49 }
 0x521   : > { %1792 = vadd.xlane.f32.xlu1 %v2434_v47  ;;  %1794 = vadd.xlane.f32.xlu0 %v2436_v50  ;;  %v2438_v53 = vpop.eup %2437 }
 0x522   : > { %2447 = vpow2.f32 %v1774_v39 }
 0x523   : > { %2449 = vpow2.f32 %v1776_v52 }
 0x524   : > { %v2440_v54 = vpop.eup %2439 }
 0x525   : > { %1796 = vadd.xlane.f32.xlu1 %v2438_v53  ;;  %1798 = vadd.xlane.f32.xlu0 %v2440_v54  ;;  %v2442_v55 = vpop.eup %2441 }
 0x528   : > { %v2444_v56 = vpop.eup %2443 }
 0x529   : > { %1800 = vadd.xlane.f32.xlu1 %v2442_v55  ;;  %1802 = vadd.xlane.f32.xlu0 %v2444_v56  ;;  %v2446_v58 = vpop.eup %2445 }
 0x52c   : > { %v2448_v40 = vpop.eup %2447 }
 0x52d   : > { %1804 = vadd.xlane.f32.xlu1 %v2446_v58  ;;  %1806 = vadd.xlane.f32.xlu0 %v2448_v40  ;;  %v2450_v59 = vpop.eup %2449 }
 0x531   : > { %1808 = vadd.xlane.f32.xlu1 %v2450_v59 }
 0x59e   : > { %v1779_v51 = vpop.xlane.xlu0 %1778 }
 0x59f   : > { %2451 = vlog2.f32 %v1779_v51 }
 0x5a2   : > { %v1781_v60 = vpop.xlane.xlu1 %1780  ;;  %v1783_v62 = vpop.xlane.xlu0 %1782 }
 0x5a3   : > { %2453 = vlog2.f32 %v1781_v60 }
 0x5a4   : > { %2455 = vlog2.f32 %v1783_v62 }
 0x5a6   : > { %v1785_v63 = vpop.xlane.xlu1 %1784  ;;  %v1787_v0 = vpop.xlane.xlu0 %1786 }
 0x5a7   : > { %2457 = vlog2.f32 %v1785_v63 }
 0x5a8   : > { %2459 = vlog2.f32 %v1787_v0 }
 0x5a9   : > { %v2452_v57 = vpop.eup %2451 }
 0x5aa   : > { %v1811_v2 = vmul.f32 0.6931472, %v2452_v57  ;;  %v1789_v5 = vpop.xlane.xlu1 %1788  ;;  %v1791_v3 = vpop.xlane.xlu0 %1790 }
 0x5ab   : > { %2461 = vlog2.f32 %v1789_v5 }
 0x5ac   : > { %v1842_v6 = vsub.f32 %v3091_v24, %v1811_v2  ;;  %2463 = vlog2.f32 %v1791_v3 }
 0x5ad   : > { %v2454_v9 = vpop.eup %2453 }
 0x5ae   : > { %v2456_v37 = vpop.eup %2455  ;;  %1858 = vst [vmem:[%s3232_s6] sm:$0xff] %v1842_v6  ;;  %v1813_v10 = vmul.f32 0.6931472, %v2454_v9  ;;  %v1793_v11 = vpop.xlane.xlu1 %1792 }
 0x5af   : > { %v1795_v15 = vpop.xlane.xlu0 %1794  ;;  %v1815_v16 = vmul.f32 0.6931472, %v2456_v37  ;;  %2465 = vlog2.f32 %v1793_v11 }
 0x5b0   : > { %v1843_v19 = vsub.f32 %v3099_v1, %v1813_v10  ;;  %2467 = vlog2.f32 %v1795_v15 }
 0x5b1   : > { %v2458_v17 = vpop.eup %2457  ;;  %v1844_v20 = vsub.f32 %v3094_v61, %v1815_v16 }
 0x5b2   : > { %v2460_v22 = vpop.eup %2459  ;;  %1859 = vst [vmem:[%s3232_s6 + $0x8] sm:$0xff] %v1843_v19  ;;  %v1817_v24 = vmul.f32 0.6931472, %v2458_v17  ;;  %v1797_v26 = vpop.xlane.xlu1 %1796 }
 0x5b3   : > { %v1799_v27 = vpop.xlane.xlu0 %1798  ;;  %1860 = vst [vmem:[%s3232_s6 + $0x10] sm:$0xff] %v1844_v20  ;;  %v1819_v28 = vmul.f32 0.6931472, %v2460_v22  ;;  %2469 = vlog2.f32 %v1797_v26 }
 0x5b4   : > { %v1845_v1 = vsub.f32 %v3102_v4, %v1817_v24  ;;  %2471 = vlog2.f32 %v1799_v27 }
 0x5b5   : > { %v2462_v29 = vpop.eup %2461  ;;  %v1846_v61 = vsub.f32 %v3107_v7, %v1819_v28 }
 0x5b6   : > { %v2464_v30 = vpop.eup %2463  ;;  %1861 = vst [vmem:[%s3232_s6 + $0x18] sm:$0xff] %v1845_v1  ;;  %v1821_v31 = vmul.f32 0.6931472, %v2462_v29  ;;  %v1801_v34 = vpop.xlane.xlu1 %1800 }
 0x5b7   : > { %v1803_v35 = vpop.xlane.xlu0 %1802  ;;  %1862 = vst [vmem:[%s3232_s6 + $0x20] sm:$0xff] %v1846_v61  ;;  %v1823_v36 = vmul.f32 0.6931472, %v2464_v30  ;;  %2473 = vlog2.f32 %v1801_v34 }
 0x5b8   : > { %v1847_v4 = vsub.f32 %v3110_v8, %v1821_v31  ;;  %2475 = vlog2.f32 %v1803_v35 }
 0x5b9   : > { %v2466_v18 = vpop.eup %2465  ;;  %v1848_v7 = vsub.f32 %v3115_v13, %v1823_v36 }
 0x5ba   : > { %v2468_v38 = vpop.eup %2467  ;;  %1863 = vst [vmem:[%s3232_s6 + $0x28] sm:$0xff] %v1847_v4  ;;  %v1825_v41 = vmul.f32 0.6931472, %v2466_v18  ;;  %v1805_v43 = vpop.xlane.xlu1 %1804 }
 0x5bb   : > { %v1807_v44 = vpop.xlane.xlu0 %1806  ;;  %1864 = vst [vmem:[%s3232_s6 + $0x30] sm:$0xff] %v1848_v7  ;;  %v1827_v45 = vmul.f32 0.6931472, %v2468_v38  ;;  %2477 = vlog2.f32 %v1805_v43 }
 0x5bc   : > { %v1849_v8 = vsub.f32 %v3118_v14, %v1825_v41  ;;  %2479 = vlog2.f32 %v1807_v44 }
 0x5bd   : > { %v2470_v21 = vpop.eup %2469  ;;  %v1850_v13 = vsub.f32 %v3123_v23, %v1827_v45 }
 0x5be   : > { %v2472_v46 = vpop.eup %2471  ;;  %1865 = vst [vmem:[%s3232_s6 + $0x38] sm:$0xff] %v1849_v8  ;;  %v1829_v47 = vmul.f32 0.6931472, %v2470_v21  ;;  %v1809_v50 = vpop.xlane.xlu1 %1808 }
 0x5bf   : > { %1866 = vst [vmem:[%s3232_s6 + $0x40] sm:$0xff] %v1850_v13  ;;  %v1831_v39 = vmul.f32 0.6931472, %v2472_v46  ;;  %2481 = vlog2.f32 %v1809_v50 }
 0x5c0   : > { %v1851_v52 = vsub.f32 %v3125_v25, %v1829_v47 }
 0x5c1   : > { %v2474_v14 = vpop.eup %2473  ;;  %v1852_v53 = vsub.f32 %v3130_v32, %v1831_v39 }
 0x5c2   : > { %v2476_v54 = vpop.eup %2475  ;;  %1867 = vst [vmem:[%s3232_s6 + $0x48] sm:$0xff] %v1851_v52  ;;  %v1833_v23 = vmul.f32 0.6931472, %v2474_v14 }
 0x5c3   : > { %1868 = vst [vmem:[%s3232_s6 + $0x50] sm:$0xff] %v1852_v53  ;;  %v1835_v55 = vmul.f32 0.6931472, %v2476_v54 }
 0x5c4   : > { %v1853_v56 = vsub.f32 %v3133_v33, %v1833_v23 }
 0x5c5   : > { %v2478_v58 = vpop.eup %2477  ;;  %v1854_v40 = vsub.f32 %v3138_v42, %v1835_v55 }
 0x5c6   : > { %v2480_v25 = vpop.eup %2479  ;;  %1869 = vst [vmem:[%s3232_s6 + $0x58] sm:$0xff] %v1853_v56  ;;  %v1837_v32 = vmul.f32 0.6931472, %v2478_v58 }
 0x5c7   : > { %1870 = vst [vmem:[%s3232_s6 + $0x60] sm:$0xff] %v1854_v40  ;;  %v1839_v59 = vmul.f32 0.6931472, %v2480_v25 }
 0x5c8   : > { %v1855_v51 = vsub.f32 %v3141_v12, %v1837_v32 }
 0x5c9   : > { %v2482_v60 = vpop.eup %2481  ;;  %v1856_v62 = vsub.f32 %v3146_v48, %v1839_v59 }
 0x5ca   : > { %1871 = vst [vmem:[%s3232_s6 + $0x68] sm:$0xff] %v1855_v51  ;;  %v1841_v33 = vmul.f32 0.6931472, %v2482_v60 }
 0x5cb   : > { %1872 = vst [vmem:[%s3232_s6 + $0x70] sm:$0xff] %v1856_v62 }
 0x5cc   : > { %v1857_v42 = vsub.f32 %v3149_v49, %v1841_v33 }
 0x5ce   : > { %1873 = vst [vmem:[%s3232_s6 + $0x78] sm:$0xff] %v1857_v42 }
 0x5cf PF: > { %s16_s23 = sadd.s32 1, %s2505_s23   ;;  %s3233_s21 = smov %s2501_s22 }
 0x5d0   : > { %p13_p8 = scmp.ge.s32.totalorder %s16_s23, 4   ;;  %s3234_s22 = smov %s3236_s24 }
 0x5d2   :  { %15 = sbr.rel (!%p13_p8) target bundleno = 2 (0x2), region = 94 }

</bundles_post_ra>
